<compile_context>
chip_gen: v5e
topology: v5e:2x2
jax: 0.10.0
libtpu: 0.0.40
codegen_flags: <defaults>
</compile_context>

<pallas_src>
import jax
import jax.numpy as jnp
from jax.experimental import pallas as pl
from jax.experimental.pallas import tpu as pltpu


# ---------------------------------------------------------------------------
# Fused MLP kernel: out = SiLU(x @ W1 + b1) @ W2 + b2   (one row tile at a time)
# ---------------------------------------------------------------------------
def _mlp_kernel(x_ref, w1_ref, b1_ref, w2_ref, b2_ref, out_ref):
    x = x_ref[...]
    # fc1: bf16 x bf16 on the MXU, f32 accumulate.
    h = jnp.dot(x, w1_ref[...], preferred_element_type=jnp.float32)
    h = h + b1_ref[...].astype(jnp.float32)
    # SiLU / swish in f32 (logistic runs on the EUP slot).
    h = h * jax.nn.sigmoid(h)
    # Feed the second matmul bf16 again (hidden activation never leaves VMEM).
    h = h.astype(w2_ref.dtype)
    out = jnp.dot(h, w2_ref[...], preferred_element_type=jnp.float32)
    out = out + b2_ref[...].astype(jnp.float32)
    out_ref[...] = out.astype(out_ref.dtype)


# ---------------------------------------------------------------------------
# Helpers
# ---------------------------------------------------------------------------
def _round_up(a, b):
    return ((a + b - 1) // b) * b


def _vmem_limit_bytes(est_bytes):
    """Clamp scoped VMEM request to the chip's physical VMEM minus headroom."""
    try:
        info = pltpu.get_tpu_info()
        cap = int(getattr(info, "vmem_capacity_bytes", 64 << 20))
    except Exception:
        cap = 64 << 20
    return int(min(max(2 * est_bytes, 32 << 20), cap - cap // 8))


# ---------------------------------------------------------------------------
# Host-side wrapper
# ---------------------------------------------------------------------------
def mlp_forward(x, params, *, tile_m=256, out_dtype=None):
    """x: [..., in_features]  ->  [..., out_features]"""
    w1, b1 = params["w1"], params["b1"]   # [F_in, F_hid], [1, F_hid]
    w2, b2 = params["w2"], params["b2"]   # [F_hid, F_out], [1, F_out]
    in_f, hid_f = w1.shape
    out_f = w2.shape[1]
    out_dtype = out_dtype or x.dtype

    lead_shape = x.shape[:-1]
    m = 1
    for d in lead_shape:
        m *= d
    # No astype / pad round trip: x goes straight to the kernel in its dtype.
    x2 = x.reshape(m, in_f)

    # Row tile: sublane-aligned, never pointlessly larger than the problem.
    tile_m = max(8, min(tile_m, _round_up(m, 8)))
    grid = (pl.cdiv(m, tile_m),)   # ragged last tile handled by block masking

    out_itemsize = jnp.dtype(out_dtype).itemsize
    flops = 2 * m * (in_f * hid_f + hid_f * out_f)
    bytes_accessed = (
        x2.size * x2.dtype.itemsize
        + w1.size * w1.dtype.itemsize + b1.size * b1.dtype.itemsize
        + w2.size * w2.dtype.itemsize + b2.size * b2.dtype.itemsize
        + m * out_f * out_itemsize
    )
    cost = pl.CostEstimate(
        flops=flops, transcendentals=m * hid_f, bytes_accessed=bytes_accessed
    )

    # VMEM footprint estimate (default 2-deep buffering on every operand).
    w_bytes = (w1.size * w1.dtype.itemsize + b1.size * b1.dtype.itemsize
               + w2.size * w2.dtype.itemsize + b2.size * b2.dtype.itemsize)
    tile_bytes = tile_m * (in_f * x2.dtype.itemsize + out_f * out_itemsize)
    hidden_bytes = tile_m * hid_f * 4
    est = 2 * (w_bytes + tile_bytes + hidden_bytes)

    out = pl.pallas_call(
        _mlp_kernel,
        out_shape=jax.ShapeDtypeStruct((m, out_f), out_dtype),
        grid_spec=pltpu.PrefetchScalarGridSpec(
            num_scalar_prefetch=0,
            grid=grid,
            in_specs=[
                pl.BlockSpec((tile_m, in_f), lambda i: (i, 0)),   # x row tile
                pl.BlockSpec((in_f, hid_f), lambda i: (0, 0)),    # W1 (resident)
                pl.BlockSpec((1, hid_f), lambda i: (0, 0)),       # b1
                pl.BlockSpec((hid_f, out_f), lambda i: (0, 0)),   # W2 (resident)
                pl.BlockSpec((1, out_f), lambda i: (0, 0)),       # b2
            ],
            out_specs=pl.BlockSpec((tile_m, out_f), lambda i: (i, 0)),
        ),
        compiler_params=pltpu.CompilerParams(
            dimension_semantics=("parallel",),
            vmem_limit_bytes=_vmem_limit_bytes(est),
        ),
        cost_estimate=cost,
    )(x2, w1, b1, w2, b2)

    return out.reshape(*lead_shape, out_f)


# ---------------------------------------------------------------------------
# Pure-JAX reference (mirrors the PyTorch module's forward with drop=0.0),
# computed in f32 from the same (possibly bf16) parameters.
# ---------------------------------------------------------------------------
def mlp_reference(x, params):
    xf = x.astype(jnp.float32)
    h = xf @ params["w1"].astype(jnp.float32) + params["b1"].astype(jnp.float32)
    h = h * jax.nn.sigmoid(h)        # SiLU ('swish')
    return h @ params["w2"].astype(jnp.float32) + params["b2"].astype(jnp.float32)


# ---------------------------------------------------------------------------
if __name__ == "__main__":
    # Small, lane-dense shapes: 2*256 = 512 rows -> two 256-row tiles
    # (grid of 2 "parallel" steps -> both v7x TensorCores busy, pipeline alive).
    batch, seq = 2, 256
    in_features, hidden_features, out_features = 128, 256, 128

    key = jax.random.PRNGKey(0)
    k_x, k_w1, k_b1, k_w2, k_b2 = jax.random.split(key, 5)

    x = jax.random.normal(
        k_x, (batch, seq, in_features), jnp.float32
    ).astype(jnp.bfloat16)

    def init(k, shape, dtype, scale=0.1):
        return (scale * jax.random.normal(k, shape, jnp.float32)).astype(dtype)

    params = {
        "w1": init(k_w1, (in_features, hidden_features), jnp.bfloat16),
        "b1": init(k_b1, (1, hidden_features), jnp.float32),
        "w2": init(k_w2, (hidden_features, out_features), jnp.bfloat16),
        "b2": init(k_b2, (1, out_features), jnp.float32),
    }

    out = mlp_forward(x, params)
    out = jax.block_until_ready(out)

    ref = mlp_reference(x, params)
    ref = jax.block_until_ready(ref)

    assert out.shape == (batch, seq, out_features) and out.dtype == jnp.bfloat16
    out_f32 = out.astype(jnp.float32)
    max_err = jnp.max(jnp.abs(out_f32 - ref))
    assert jnp.allclose(out_f32, ref, rtol=3e-2, atol=3e-2), \
        f"max abs err {max_err}"

    print("KERNEL_OK")
</pallas_src>

<mosaic_0001>
module attributes {stable_mosaic.version = 11 : i64} {
  func.func @_mlp_kernel(%arg0: i32, %arg1: memref<256x128xbf16, #tpu.memory_space<vmem>>, %arg2: memref<128x256xbf16, #tpu.memory_space<vmem>>, %arg3: memref<1x256xf32, #tpu.memory_space<vmem>>, %arg4: memref<256x128xbf16, #tpu.memory_space<vmem>>, %arg5: memref<1x128xf32, #tpu.memory_space<vmem>>, %arg6: memref<256x128xbf16, #tpu.memory_space<vmem>>) attributes {dimension_semantics = [#tpu.dimension_semantics<parallel>], iteration_bounds = array<i64: 2>, scalar_prefetch = 0 : i64, scratch_operands = 0 : i64, tpu.core_type = #tpu.core_type<tc>, window_params = [{transform_indices = @transform_0, window_bounds = array<i64: 256, 128>}, {pipeline_mode = #tpu.pipeline_mode<synchronous>, transform_indices = @transform_1, window_bounds = array<i64: 128, 256>}, {pipeline_mode = #tpu.pipeline_mode<synchronous>, transform_indices = @transform_2, window_bounds = array<i64: 1, 256>}, {pipeline_mode = #tpu.pipeline_mode<synchronous>, transform_indices = @transform_3, window_bounds = array<i64: 256, 128>}, {pipeline_mode = #tpu.pipeline_mode<synchronous>, transform_indices = @transform_4, window_bounds = array<i64: 1, 128>}, {transform_indices = @transform_5, window_bounds = array<i64: 256, 128>}]} {
    %c0 = arith.constant 0 : index
    %c0_0 = arith.constant 0 : index
    %0 = vector.load %arg1[%c0, %c0_0] : memref<256x128xbf16, #tpu.memory_space<vmem>>, vector<256x128xbf16>
    %c0_1 = arith.constant 0 : index
    %c0_2 = arith.constant 0 : index
    %1 = vector.load %arg2[%c0_1, %c0_2] : memref<128x256xbf16, #tpu.memory_space<vmem>>, vector<128x256xbf16>
    %cst = arith.constant dense<0.000000e+00> : vector<256x256xf32>
    %2 = tpu.matmul %0, %1, %cst {dimension_numbers = #tpu.dot_dimension_numbers<[1], [0], [0], [1], [0, 0, 1, 1], [], []>} : vector<256x128xbf16>, vector<128x256xbf16>, vector<256x256xf32> -> vector<256x256xf32>
    %c0_3 = arith.constant 0 : index
    %c0_4 = arith.constant 0 : index
    %3 = vector.load %arg3[%c0_3, %c0_4] : memref<1x256xf32, #tpu.memory_space<vmem>>, vector<1x256xf32>
    %4 = vector.broadcast %3 : vector<1x256xf32> to vector<256x256xf32>
    %5 = arith.addf %2, %4 : vector<256x256xf32>
    %6 = arith.negf %5 : vector<256x256xf32>
    %7 = math.exp %6 : vector<256x256xf32>
    %cst_5 = arith.constant 1.000000e+00 : f32
    %8 = vector.broadcast %cst_5 : f32 to vector<256x256xf32>
    %9 = arith.addf %8, %7 : vector<256x256xf32>
    %10 = arith.divf %8, %9 : vector<256x256xf32>
    %11 = arith.mulf %5, %10 : vector<256x256xf32>
    %12 = arith.truncf %11 : vector<256x256xf32> to vector<256x256xbf16>
    %c0_6 = arith.constant 0 : index
    %c0_7 = arith.constant 0 : index
    %13 = vector.load %arg4[%c0_6, %c0_7] : memref<256x128xbf16, #tpu.memory_space<vmem>>, vector<256x128xbf16>
    %cst_8 = arith.constant dense<0.000000e+00> : vector<256x128xf32>
    %14 = tpu.matmul %12, %13, %cst_8 {dimension_numbers = #tpu.dot_dimension_numbers<[1], [0], [0], [1], [0, 0, 1, 1], [], []>} : vector<256x256xbf16>, vector<256x128xbf16>, vector<256x128xf32> -> vector<256x128xf32>
    %c0_9 = arith.constant 0 : index
    %c0_10 = arith.constant 0 : index
    %15 = vector.load %arg5[%c0_9, %c0_10] : memref<1x128xf32, #tpu.memory_space<vmem>>, vector<1x128xf32>
    %16 = vector.broadcast %15 : vector<1x128xf32> to vector<256x128xf32>
    %17 = arith.addf %14, %16 : vector<256x128xf32>
    %18 = arith.truncf %17 : vector<256x128xf32> to vector<256x128xbf16>
    %c0_11 = arith.constant 0 : index
    %c0_12 = arith.constant 0 : index
    %19 = vector.load %arg6[%c0_11, %c0_12] : memref<256x128xbf16, #tpu.memory_space<vmem>>, vector<256x128xbf16>
    tpu.vector_store %arg6[%c0_11, %c0_12], %18 {strides = array<i32>} : memref<256x128xbf16, #tpu.memory_space<vmem>>, vector<256x128xbf16>,
    return
  }
  func.func @transform_0(%arg0: i32) -> (i32, i32) {
    %c0_i32 = arith.constant 0 : i32
    %c0_i32_0 = arith.constant 0 : i32
    return %arg0, %c0_i32 : i32, i32
  }
  func.func @transform_1(%arg0: i32) -> (i32, i32) {
    %c0_i32 = arith.constant 0 : i32
    %c0_i32_0 = arith.constant 0 : i32
    %c0_i32_1 = arith.constant 0 : i32
    return %c0_i32, %c0_i32_0 : i32, i32
  }
  func.func @transform_2(%arg0: i32) -> (i32, i32) {
    %c0_i32 = arith.constant 0 : i32
    %c0_i32_0 = arith.constant 0 : i32
    %c0_i32_1 = arith.constant 0 : i32
    return %c0_i32, %c0_i32_0 : i32, i32
  }
  func.func @transform_3(%arg0: i32) -> (i32, i32) {
    %c0_i32 = arith.constant 0 : i32
    %c0_i32_0 = arith.constant 0 : i32
    %c0_i32_1 = arith.constant 0 : i32
    return %c0_i32, %c0_i32_0 : i32, i32
  }
  func.func @transform_4(%arg0: i32) -> (i32, i32) {
    %c0_i32 = arith.constant 0 : i32
    %c0_i32_0 = arith.constant 0 : i32
    %c0_i32_1 = arith.constant 0 : i32
    return %c0_i32, %c0_i32_0 : i32, i32
  }
  func.func @transform_5(%arg0: i32) -> (i32, i32) {
    %c0_i32 = arith.constant 0 : i32
    %c0_i32_0 = arith.constant 0 : i32
    return %arg0, %c0_i32 : i32, i32
  }
}

</mosaic_0001>

<bundles_post_ra>
// kernel: tpu_custom_call.1
= control target key start
LH: loop header
LB: loop body
LE: loop exit
PB: predicated region body
PF: predicated region fallthrough
CT: control target
= control target key end

     0   :  { %10 = vsyncpa [#allocation3], 0  ;;  %s5802_s0 = inlined_call_operand.hbm [shape: bf16[512,128], index: 0, kind: input, shape index: {}]   ;;  %s5803_s1 = inlined_call_operand.hbm [shape: bf16[128,256], index: 1, kind: input, shape index: {}]   ;;  %s5804_s2 = inlined_call_operand.hbm [shape: f32[1,256], index: 2, kind: input, shape index: {}]   ;;  %s5805_s3 = inlined_call_operand.hbm [shape: bf16[256,128], index: 3, kind: input, shape index: {}]   ;;  %s5806_s4 = inlined_call_operand.vmem [shape: f32[1,128], index: 4, kind: input, shape index: {}]   ;;  %s5807_s5 = inlined_call_operand.hbm [shape: bf16[512,128], index: 5, kind: output, shape index: {}]  }
   0x1   :  { %12 = vsyncpa [#allocation3 + $0x1], 0 }
   0x2   :  { %13 = vsyncpa [#allocation6], 0 }
   0x3   :  { %14 = vsyncpa [#allocation9], 0 }
   0x4   :  { %15 = vsyncpa [#allocation4], 0 }
   0x5   :  { %17 = vsyncpa [#allocation4 + $0x1], 0  ;;  %s3504_s18 = smov 0   ;;  %s3506_s19 = smov 0  }
   0x6   :  { %s3508_s20 = smov 0   ;;  %s3510_s21 = smov 0  }
   0x7 LB: > { %s3525_s22 = sadd.s32 4294967295, %s3463_s21   ;;  %s2507_s23 = sadd.s32 4294967294, %s3463_s21   ;;  %s3463_s21 = sphi %s3510_s21, %s5998_s21   ;;  %s3459_s20 = sphi %s3508_s20, %s5997_s20   ;;  %s3455_s19 = sphi %s3506_s19, %s5996_s19   ;;  %s3451_s18 = sphi %s3504_s18, %s5995_s18  }
   0x8   : > { %p43_p0 = scmp.ne.s32.totalorder %s3455_s19, %s3451_s18  ;;  %p44_p1 = scmp.eq.s32.totalorder %s3525_s22, 0 }
   0x9   : > { %p151_p2 = scmp.eq.s32.totalorder %s3525_s22, 1  ;;  %p157_p3 = scmp.eq.s32.totalorder %s2507_s23, 1 }
   0xa   : > { %p3534_p4 = por %p44_p1, %p43_p0  ;;  %p2508_p5 = scmp.ge.s32.totalorder %s3463_s21, 1 }
   0xb   : > { %p3539_p6 = por %p157_p3, %p43_p0  ;;  %p164_p7 = scmp.lt.s32.totalorder %s3463_s21, 3 }
   0xc   : > { %s175_s28 = sshll.u32 %s5803_s1, 4  ;;  %s3465_s30 = smov [#allocation5]   ;;  %s176_s28 = int_to_ptr.hbm [resolvable:$true] %s175_s28 }
   0xd   : > { %p3547_p8 = pnand %p2508_p5, %p164_p7  ;;  %s177_s6 = sshll.u32 %s3465_s30, 4  ;;  %s178_s6 = int_to_ptr.vmem [resolvable:$true] %s177_s6 }
   0xe   : > { %s190_s10 = sshll.u32 %s5804_s2, 4  ;;  %s3466_s11 = smov 128   ;;  %s191_s10 = int_to_ptr.hbm [resolvable:$true] %s190_s10 }
   0xf   : > { %p2944_p9 = pneg %p3547_p8  ;;  %s3467_s12 = smov 8  }
  0x10   : > { %s3468_s13 = smov [#allocation7]   ;;  %s201_s17 = sshll.u32 %s5805_s3, 4  ;;  %s202_s17 = int_to_ptr.hbm [resolvable:$true] %s201_s17 }
  0x11   : > { %p3555_p10 = pnand %p2944_p9, %p44_p1  ;;  %s192_s14 = sshll.u32 %s3468_s13, 4  ;;  %s193_s14 = int_to_ptr.vmem [resolvable:$true] %s192_s14 }
  0x12   : > { %s3469_s23 = smov [#allocation8]   ;;  %s5808_s27 = smov 64  }
  0x13   : > { %2947 = dma.hbm_to_vmem [thread:$0]  (!%p3555_p10), %s176_s28, 2048, %s178_s6, [#allocation6], %s3466_s11, %s3466_s11, %s3467_s12  }
  0x14   : > { %2950 = dma.hbm_to_vmem [thread:$0]  (!%p3555_p10), %s191_s10, 32, %s193_s14, [#allocation6]  }
  0x15   : > { %s203_s26 = sshll.u32 %s3469_s23, 4  ;;  %s3471_s28 = smov 4   ;;  %s204_s26 = int_to_ptr.vmem [resolvable:$true] %s203_s26 }
  0x16   : > { %2953 = dma.hbm_to_vmem [thread:$0]  (!%p3555_p10), %s202_s17, 2048, %s204_s26, [#allocation9], %s5808_s27, %s5808_s27, %s3471_s28  }
  0x17   : > { %s3576_s30 = sadd.s32 1, %s3463_s21   ;;  %s30_s8 = sadd.s32 1, %s3459_s20 }
  0x18   : > { %s27_s6 = ssub.s32 %s3463_s21, %s3576_s30  ;;  %p37_p13 = scmp.ne.s32.totalorder %s3459_s20, %s3455_s19 }
  0x19   : > { %p28_p12 = scmp.eq.s32.totalorder %s27_s6, 0  ;;  %p38_p0 = scmp.eq.s32.totalorder %s3463_s21, 0 }
  0x1a   : > { %p3589_p3 = por %p151_p2, %p37_p13  ;;  %p2965_p5 = scmp.lt.s32.totalorder %s3463_s21, 2 }
  0x1b   : > { %s3585_s9 = scalar_select %p28_p12, %s3459_s20, %s30_s8  }
  0x1c   : > { %s220_s7 = sand.u32 1, %s3459_s20   ;;  %s2783_s11 = sshll.u32 %s3463_s21, 7 }
  0x1d   : > { %p39_p7 = por %p38_p0, %p37_p13  ;;  %s2513_s12 = sshll.u32 %s220_s7, 7 }
  0x1e   : > { %s229_s15 = scalar_lea.hbm %s5802_s0, %s2783_s11  ;;  %s224_s17 = scalar_lea.vmem [#allocation2], %s2513_s12 }
  0x1f   : > { %s230_s16 = sshll.u32 %s229_s15, 4  ;;  %s232_s23 = sshll.u32 %s224_s17, 4  ;;  %s231_s16 = int_to_ptr.hbm [resolvable:$true] %s230_s16  ;;  %s233_s23 = int_to_ptr.vmem [resolvable:$true] %s232_s23 }
  0x20   : > { %p3599_p9 = pnand %p2965_p5, %p39_p7  ;;  %s221_s6 = scalar_lea.sflag [#allocation3], %s220_s7 }
  0x21   : > { %s3359_s8 = sshra.s32 %s231_s16, 4  ;;  %s3366_s12 = scalar_lea.hbm %s5802_s0, 256  ;;  %s3360_s8 = int_to_ptr.hbm [resolvable:$true] %s3359_s8 }
  0x22   : > { %s3361_s27 = scalar_lea.hbm %s3360_s8, 128  ;;  %p3363_p10 = pneg %p3599_p9 }
  0x23   : > { %p3362_p2 = scmp.ne.s32.totalorder %s3360_s8, %s3361_s27  ;;  %p3367_p0 = scmp.lt.s32.totalorder %s3360_s8, %s5802_s0 }
  0x24   : > { %p3368_p5 = scmp.lt.s32.totalorder %s3366_s12, %s3361_s27 }
  0x25   : > { %p3364_p12 = pnand %p3363_p10, %p3362_p2 }
  0x26   : > { %p3369_p7 = por %p3368_p5, %p3367_p0 }
  0x27   : > { %p3365_p13 = pneg %p3364_p12 }
  0x29   : > { %p3370_p11 = pnand %p3369_p7, %p3365_p13 }
  0x2b   : > { %3373 = shalt.err (!%p3370_p11)
}
  0x2c   : > { %s5815_s7 = smov 64   ;;  %244 = sbr.rel (%p3547_p8) target bundleno = 692 (0x2b4), region = 40 }
  0x2d   : > { %2957 = dma.hbm_to_vmem [thread:$0]  (!%p3599_p9), %s231_s16, 2048, %s233_s23, %s221_s6, %s5815_s7, %s5815_s7, %s3471_s28  }
  0x2e   : > { %s3619_s17 = sand.u32 (!%p3547_p8), 1, %s3455_s19  }
  0x2f   : > { %s2517_s27 = sshll.u32 (!%p3547_p8), %s3619_s17, 7  ;;  %s247_s8 = scalar_lea.sflag (!%p3547_p8), [#allocation3], %s3619_s17 }
  0x30   : > { %s3625_s11 = scalar_lea.vmem (!%p3547_p8), [#allocation2], %s2517_s27 }
  0x31   : > { %3434 = dma.done.wait (%p3534_p4), %s247_s8, 2048  }
  0x32   : > { %3436 = vsyncadd (%p3534_p4), %s247_s8, 4294965248 }
  0x33   : > { %3438 = dma.done.wait (%p44_p1), [#allocation6], 2080  }
  0x34   : > { %3440 = vsyncadd (%p44_p1), [#allocation6], 4294965216 }
  0x35   : > { %3442 = dma.done.wait (%p44_p1), [#allocation9], 2048  }
  0x36   : > { %3444 = vsyncadd (%p44_p1), [#allocation9], 4294965248  ;;  %v2644_v0 = vld [vmem:[#allocation5 + $0x70] sm:$0xf]  ;;  %v2815_v1 = vld [vmem:[#allocation5 + $0x74] sm:$0xf0] }
  0x37   : > { %v2814_v2 = vld [vmem:[#allocation5 + $0x74] sm:$0xf]  ;;  %v2645_v3 = vor.u32 %v2815_v1, %v2644_v0  ;;  %v2646_v4 = vld [vmem:[#allocation5 + $0x78] sm:$0xf0]  ;;  %v2636_v5 = vld [vmem:[#allocation5 + $0x60] sm:$0xf] }
  0x38   : > { %v2813_v6 = vld [vmem:[#allocation5 + $0x64] sm:$0xf0]  ;;  %v2649_v7 = vor.u32 %v2814_v2, %v2646_v4  ;;  %v2812_v8 = vld [vmem:[#allocation5 + $0x64] sm:$0xf]  ;;  %v2638_v9 = vld [vmem:[#allocation5 + $0x68] sm:$0xf0] }
  0x39   : > { %525 = vmatpush.bf16.msra.mxu0 %v2645_v3  ;;  %v2637_v10 = vor.u32 %v2813_v6, %v2636_v5  ;;  %v2641_v11 = vor.u32 %v2812_v8, %v2638_v9  ;;  %v2628_v12 = vld [vmem:[#allocation5 + $0x50] sm:$0xf]  ;;  %v2811_v13 = vld [vmem:[#allocation5 + $0x54] sm:$0xf0]  ;;  %v2810_v14 = vld [vmem:[#allocation5 + $0x54] sm:$0xf] }
  0x3a   : > { %614 = vmatpush.bf16.msra.mxu1 %v2649_v7  ;;  %v2630_v15 = vld [vmem:[#allocation5 + $0x58] sm:$0xf0]  ;;  %v2629_v16 = vor.u32 %v2811_v13, %v2628_v12  ;;  %v2620_v18 = vld [vmem:[#allocation5 + $0x40] sm:$0xf]  ;;  %v2809_v19 = vld [vmem:[#allocation5 + $0x44] sm:$0xf0] }
  0x3b   : > { %v2633_v17 = vor.u32 %v2810_v14, %v2630_v15  ;;  %v2808_v20 = vld [vmem:[#allocation5 + $0x44] sm:$0xf]  ;;  %v2622_v21 = vld [vmem:[#allocation5 + $0x48] sm:$0xf0]  ;;  %v2621_v22 = vor.u32 %v2809_v19, %v2620_v18  ;;  %v2612_v24 = vld [vmem:[#allocation5 + $0x30] sm:$0xf] }
  0x3c   : > { %v2625_v23 = vor.u32 %v2808_v20, %v2622_v21  ;;  %v2807_v25 = vld [vmem:[#allocation5 + $0x34] sm:$0xf0]  ;;  %v2806_v26 = vld [vmem:[#allocation5 + $0x34] sm:$0xf]  ;;  %v2614_v27 = vld [vmem:[#allocation5 + $0x38] sm:$0xf0] }
  0x3d   : > { %526 = vmatpush.bf16.msra.mxu0 %v2637_v10  ;;  %v2613_v28 = vor.u32 %v2807_v25, %v2612_v24  ;;  %v2617_v29 = vor.u32 %v2806_v26, %v2614_v27  ;;  %v2604_v30 = vld [vmem:[#allocation5 + $0x20] sm:$0xf]  ;;  %v2805_v31 = vld [vmem:[#allocation5 + $0x24] sm:$0xf0]  ;;  %v2804_v32 = vld [vmem:[#allocation5 + $0x24] sm:$0xf] }
  0x3e   : > { %615 = vmatpush.bf16.msra.mxu1 %v2641_v11  ;;  %v2606_v33 = vld [vmem:[#allocation5 + $0x28] sm:$0xf0]  ;;  %v2605_v34 = vor.u32 %v2805_v31, %v2604_v30  ;;  %v2596_v36 = vld [vmem:[#allocation5 + $0x10] sm:$0xf]  ;;  %v2803_v37 = vld [vmem:[#allocation5 + $0x14] sm:$0xf0] }
  0x3f   : > { %v2609_v35 = vor.u32 %v2804_v32, %v2606_v33  ;;  %v2802_v38 = vld [vmem:[#allocation5 + $0x14] sm:$0xf]  ;;  %v2598_v39 = vld [vmem:[#allocation5 + $0x18] sm:$0xf0]  ;;  %v2597_v40 = vor.u32 %v2803_v37, %v2596_v36  ;;  %v2588_v42 = vld [vmem:[#allocation5] sm:$0xf] }
  0x40   : > { %v2601_v41 = vor.u32 %v2802_v38, %v2598_v39  ;;  %v2801_v43 = vld [vmem:[#allocation5 + $0x4] sm:$0xf0]  ;;  %v2800_v44 = vld [vmem:[#allocation5 + $0x4] sm:$0xf]  ;;  %v2590_v45 = vld [vmem:[#allocation5 + $0x8] sm:$0xf0] }
  0x41   : > { %527 = vmatpush.bf16.msra.mxu0 %v2629_v16  ;;  %v2589_v46 = vor.u32 %v2801_v43, %v2588_v42  ;;  %v2593_v47 = vor.u32 %v2800_v44, %v2590_v45  ;;  %v2784_v48 = vld [vmem:[%s3625_s11] sm:$0xff]  ;;  %v2785_v49 = vld [vmem:[%s3625_s11 + $0x8] sm:$0xff]  ;;  %v2786_v50 = vld [vmem:[%s3625_s11 + $0x10] sm:$0xff]  ;;  %s4953_s28 = scalar_lea.vmem [#allocation10], %s2517_s27  ;;  %s2832_s26 = sshll.u32 %s3525_s22, 7 }
  0x42   : > { %616 = vmatpush.bf16.msra.mxu1 %v2633_v17  ;;  %v2787_v51 = vld [vmem:[%s3625_s11 + $0x18] sm:$0xff]  ;;  %v2788_v52 = vld [vmem:[%s3625_s11 + $0x20] sm:$0xff]  ;;  %v2789_v53 = vld [vmem:[%s3625_s11 + $0x28] sm:$0xff]  ;;  %s2401_s12 = scalar_lea.hbm %s5807_s5, %s2832_s26  ;;  %s2402_s14 = sshll.u32 %s4953_s28, 4  ;;  %s2403_s14 = int_to_ptr.vmem [resolvable:$true] %s2402_s14 }
  0x43   : > { %v2790_v54 = vld [vmem:[%s3625_s11 + $0x30] sm:$0xff]  ;;  %v2823_v55 = vld [vmem:[#allocation8 + $0x38] sm:$0xff]  ;;  %v2820_v63 = vld [vmem:[#allocation8 + $0x20] sm:$0xff]  ;;  %s2404_s15 = sshll.u32 %s2401_s12, 4  ;;  %s2390_s22 = scalar_lea.sflag [#allocation4], %s3619_s17  ;;  %s2405_s15 = int_to_ptr.hbm [resolvable:$true] %s2404_s15 }
  0x44   : > { %v2831_v56 = vld [vmem:[#allocation8 + $0x78] sm:$0xff]  ;;  %2147 = vmatpush.bf16.msra.mxu2 %v2823_v55  ;;  %v2822_v58 = vld [vmem:[#allocation8 + $0x30] sm:$0xff]  ;;  %v2821_v60 = vld [vmem:[#allocation8 + $0x28] sm:$0xff]  ;;  %s3403_s7 = sshra.s32 %s2405_s15, 4  ;;  %s3409_s24 = scalar_lea.hbm %s5807_s5, 256  ;;  %s3404_s7 = int_to_ptr.hbm [resolvable:$true] %s3403_s7 }
  0x45   : > { %528 = vmatpush.bf16.msra.mxu0 %v2621_v22  ;;  %v2791_v57 = vld [vmem:[%s3625_s11 + $0x38] sm:$0xff]  ;;  %2236 = vmatpush.bf16.msra.mxu3 %v2831_v56  ;;  %v2829_v61 = vld [vmem:[#allocation8 + $0x68] sm:$0xff]  ;;  %v343_v62 = vld [vmem:[#allocation7] sm:$0x3]  ;;  %s3405_s27 = scalar_lea.hbm %s3404_s7, 128  ;;  %p3410_p11 = scmp.lt.s32.totalorder %s3404_s7, %s5807_s5 }
  0x46   : > { %617 = vmatpush.bf16.msra.mxu1 %v2625_v23  ;;  %v2830_v59 = vld [vmem:[#allocation8 + $0x70] sm:$0xff]  ;;  %v2828_v0 = vld [vmem:[#allocation8 + $0x60] sm:$0xff]  ;;  %v3647_v1 = vperm.slane %v343_v62, 0  ;;  %v3649_v2 = vperm.slane %v343_v62, 1  ;;  %v2819_v3 = vld [vmem:[#allocation8 + $0x18] sm:$0xff]  ;;  %p3406_p1 = scmp.ne.s32.totalorder %s3404_s7, %s3405_s27  ;;  %p3411_p9 = scmp.lt.s32.totalorder %s3409_s24, %s3405_s27 }
  0x47   : > { %v2827_v4 = vld [vmem:[#allocation8 + $0x58] sm:$0xff]  ;;  %v2818_v10 = vld [vmem:[#allocation8 + $0x10] sm:$0xff]  ;;  %v2817_v14 = vld [vmem:[#allocation8 + $0x8] sm:$0xff] }
  0x48   : > { %2148 = vmatpush.bf16.msra.mxu2 %v2822_v58  ;;  %v2792_v5 = vld [vmem:[%s3625_s11 + $0x40] sm:$0xff]  ;;  %v2826_v11 = vld [vmem:[#allocation8 + $0x50] sm:$0xff]  ;;  %v2825_v15 = vld [vmem:[#allocation8 + $0x48] sm:$0xff]  ;;  %p3407_p4 = pnand %p3406_p1, %p3589_p3  ;;  %p3412_p2 = por %p3411_p9, %p3410_p11 }
  0x49   : > { %529 = vmatpush.bf16.msra.mxu0 %v2613_v28  ;;  %2237 = vmatpush.bf16.msra.mxu3 %v2830_v59  ;;  %v2816_v22 = vld [vmem:[#allocation8] sm:$0xff] }
  0x4a   : > { %618 = vmatpush.bf16.msra.mxu1 %v2617_v29  ;;  %v2824_v23 = vld [vmem:[#allocation8 + $0x40] sm:$0xff]  ;;  %p3408_p8 = pneg %p3407_p4 }
  0x4b   : > { %v2793_v28 = vld [vmem:[%s3625_s11 + $0x48] sm:$0xff] }
  0x4c   : > { %2149 = vmatpush.bf16.msra.mxu2 %v2821_v60  ;;  %p3413_p10 = pnand %p3412_p2, %p3408_p8 }
  0x4d   : > { %530 = vmatpush.bf16.msra.mxu0 %v2605_v34  ;;  %2238 = vmatpush.bf16.msra.mxu3 %v2829_v61 }
  0x4e   : > { %619 = vmatpush.bf16.msra.mxu1 %v2609_v35 }
  0x50   : > { %2150 = vmatpush.bf16.msra.mxu2 %v2820_v63 }
  0x51   : > { %531 = vmatpush.bf16.msra.mxu0 %v2597_v40  ;;  %2239 = vmatpush.bf16.msra.mxu3 %v2828_v0  ;;  %v2794_v0 = vld [vmem:[%s3625_s11 + $0x50] sm:$0xff] }
  0x52   : > { %620 = vmatpush.bf16.msra.mxu1 %v2601_v41 }
  0x54   : > { %2151 = vmatpush.bf16.msra.mxu2 %v2819_v3 }
  0x55   : > { %532 = vmatpush.bf16.msra.mxu0 %v2589_v46  ;;  %2240 = vmatpush.bf16.msra.mxu3 %v2827_v4 }
  0x56   : > { %621 = vmatpush.bf16.msra.mxu1 %v2593_v47 }
  0x58   : > { %533 = vmatmul.bf16.vlgmr.msra.gmra.mxu0 %v2784_v48  ;;  %2152 = vmatpush.bf16.msra.mxu2 %v2818_v10 }
  0x59   : > { %622 = vmatmul.bf16.vlgmr.msra.gmra.mxu1 %v2784_v48  ;;  %2241 = vmatpush.bf16.msra.mxu3 %v2826_v11 }
  0x5c   : > { %2153 = vmatpush.bf16.msra.mxu2 %v2817_v14 }
  0x5d   : > { %2242 = vmatpush.bf16.msra.mxu3 %v2825_v15 }
  0x60   : > { %2154 = vmatpush.bf16.msra.mxu2 %v2816_v22 }
  0x61   : > { %2243 = vmatpush.bf16.msra.mxu3 %v2824_v23 }
  0x68   : > { %538 = vmatmul.bf16.gmra.mxu0 %v2785_v49 }
  0x69   : > { %627 = vmatmul.bf16.gmra.mxu1 %v2785_v49 }
  0x78   : > { %543 = vmatmul.bf16.gmra.mxu0 %v2786_v50 }
  0x79   : > { %632 = vmatmul.bf16.gmra.mxu1 %v2786_v50 }
  0x88   : > { %548 = vmatmul.bf16.gmra.mxu0 %v2787_v51 }
  0x89   : > { %637 = vmatmul.bf16.gmra.mxu1 %v2787_v51 }
  0x98   : > { %553 = vmatmul.bf16.gmra.mxu0 %v2788_v52 }
  0x99   : > { %642 = vmatmul.bf16.gmra.mxu1 %v2788_v52 }
  0xa8   : > { %558 = vmatmul.bf16.gmra.mxu0 %v2789_v53 }
  0xa9   : > { %647 = vmatmul.bf16.gmra.mxu1 %v2789_v53 }
  0xb8   : > { %563 = vmatmul.bf16.gmra.mxu0 %v2790_v54 }
  0xb9   : > { %652 = vmatmul.bf16.gmra.mxu1 %v2790_v54 }
  0xc8   : > { %568 = vmatmul.bf16.gmra.mxu0 %v2791_v57 }
  0xc9   : > { %657 = vmatmul.bf16.gmra.mxu1 %v2791_v57 }
  0xd5   : > { %v534_v6 = vpop.f32.mrf.mxu0 }
  0xd6   : > { %v3653_v7 = vadd.f32 %v534_v6, %v3647_v1  ;;  %v623_v8 = vpop.f32.mrf.mxu1 }
  0xd7   : > { %v3656_v9 = vadd.f32 %v623_v8, %v3649_v2 }
  0xd8   : > { %v2650_v12 = vmul.f32 -1.442695, %v3653_v7  ;;  %573 = vmatmul.bf16.gmra.mxu0 %v2792_v5 }
  0xd9   : > { %v2651_v13 = vmul.f32 -1.442695, %v3656_v9  ;;  %662 = vmatmul.bf16.gmra.mxu1 %v2792_v5 }
  0xda   : > { %3012 = vpow2.f32 %v2650_v12 }
  0xdb   : > { %3014 = vpow2.f32 %v2651_v13 }
  0xdd   : > { %v536_v16 = vpop.f32.mrf.mxu0 }
  0xde   : > { %v3661_v17 = vadd.f32 %v536_v16, %v3647_v1  ;;  %v625_v18 = vpop.f32.mrf.mxu1 }
  0xdf   : > { %v3664_v19 = vadd.f32 %v625_v18, %v3649_v2 }
  0xe0   : > { %v3013_v20 = vpop.eup %3012  ;;  %v2652_v21 = vmul.f32 -1.442695, %v3661_v17 }
  0xe1   : > { %v3015_v24 = vpop.eup %3014  ;;  %v3667_v25 = vadd.f32 1.0, %v3013_v20  ;;  %v2653_v26 = vmul.f32 -1.442695, %v3664_v19 }
  0xe2   : > { %v3670_v27 = vadd.f32 1.0, %v3015_v24  ;;  %3016 = vpow2.f32 %v2652_v21 }
  0xe3   : > { %3018 = vrcp.f32 %v3667_v25  ;;  %v968_v53 = vand.u32 2147483647, %v3667_v25  ;;  %v970_v57 = vand.u32 2147483648, %v3667_v25  ;;  %vm964_vm0 = vweird.f32 %v3667_v25 }
  0xe4   : > { %3020 = vrcp.f32 %v3670_v27  ;;  %v983_v60 = vand.u32 2147483647, %v3670_v27  ;;  %vm979_vm2 = vweird.f32 %v3670_v27  ;;  %v985_v63 = vand.u32 2147483648, %v3670_v27 }
  0xe5   : > { %3022 = vpow2.f32 %v2653_v26  ;;  %v539_v29 = vpop.f32.mrf.mxu0  ;;  %vm3725_vm3 = vcmp.eq.f32.partialorder %v968_v53, 8.507059e+37  ;;  %v971_v8 = vor.u32 1.1754944e-38, %v970_v57 }
  0xe6   : > { %v3676_v30 = vadd.f32 %v539_v29, %v3647_v1  ;;  %v628_v31 = vpop.f32.mrf.mxu1  ;;  %vm3744_vm6 = vcmp.eq.f32.partialorder %v983_v60, 8.507059e+37 }
  0xe7   : > { %v3679_v32 = vadd.f32 %v628_v31, %v3649_v2 }
  0xe8   : > { %v3017_v33 = vpop.eup %3016  ;;  %v2654_v34 = vmul.f32 -1.442695, %v3676_v30  ;;  %578 = vmatmul.bf16.gmra.mxu0 %v2793_v28 }
  0xe9   : > { %v3682_v35 = vpop.eup %3018  ;;  %v3684_v36 = vadd.f32 1.0, %v3017_v33  ;;  %v2655_v37 = vmul.f32 -1.442695, %v3679_v32  ;;  %667 = vmatmul.bf16.gmra.mxu1 %v2793_v28 }
  0xea   : > { %v3687_v38 = vpop.eup %3020  ;;  %v960_v39 = vmul.f32 %v3682_v35, %v3667_v25  ;;  %3024 = vpow2.f32 %v2654_v34  ;;  %vm965_vm1 = vweird.f32 %v3682_v35 }
  0xeb   : > { %v3023_v40 = vpop.eup %3022  ;;  %v975_v41 = vmul.f32 %v3687_v38, %v3670_v27  ;;  %3026 = vrcp.f32 %v3684_v36  ;;  %vm980_vm4 = vweird.f32 %v3687_v38  ;;  %vm3739_vm5 = vmor %vm964_vm0, %vm965_vm1  ;;  %vm994_vm7 = vweird.f32 %v3684_v36 }
  0xec   : > { %v961_v42 = vsub.f32 1.0, %v960_v39  ;;  %v3694_v43 = vadd.f32 1.0, %v3023_v40  ;;  %3028 = vpow2.f32 %v2655_v37  ;;  %v998_v16 = vand.u32 2147483647, %v3684_v36  ;;  %vm3772_vm10 = vmor %vm979_vm2, %vm980_vm4 }
  0xed   : > { %v541_v44 = vpop.f32.mrf.mxu0  ;;  %v976_v47 = vsub.f32 1.0, %v975_v41  ;;  %v1000_v18 = vand.u32 2147483648, %v3684_v36  ;;  %v986_v41 = vor.u32 1.1754944e-38, %v985_v63 }
  0xee   : > { %3030 = vrcp.f32 %v3694_v43  ;;  %v3698_v45 = vadd.f32 %v541_v44, %v3647_v1  ;;  %v630_v46 = vpop.f32.mrf.mxu1  ;;  %v962_v50 = vmul.f32 %v3682_v35, %v961_v42  ;;  %v1013_v29 = vand.u32 2147483647, %v3694_v43 }
  0xef   : > { %v3701_v48 = vadd.f32 %v630_v46, %v3649_v2  ;;  %v977_v59 = vmul.f32 %v3687_v38, %v976_v47  ;;  %v1015_v31 = vand.u32 2147483648, %v3694_v43  ;;  %v1001_v42 = vor.u32 1.1754944e-38, %v1000_v18 }
  0xf0   : > { %v3025_v49 = vpop.eup %3024  ;;  %v2656_v51 = vmul.f32 -1.442695, %v3698_v45  ;;  %v963_v62 = vadd.f32 %v3682_v35, %v962_v50  ;;  %vm1009_vm12 = vweird.f32 %v3694_v43  ;;  %vm999_vm13 = vcmp.eq.f32.partialorder %v998_v16, 8.507059e+37 }
  0xf1   : > { %v3705_v52 = vpop.eup %3026  ;;  %v3708_v54 = vadd.f32 1.0, %v3025_v49  ;;  %v2657_v55 = vmul.f32 -1.442695, %v3701_v48  ;;  %v978_v14 = vadd.f32 %v3687_v38, %v977_v59  ;;  %vm1014_vm15 = vcmp.eq.f32.partialorder %v1013_v29, 8.507059e+37 }
  0xf2   : > { %v3029_v56 = vpop.eup %3028  ;;  %3032 = vpow2.f32 %v2656_v51  ;;  %v990_v58 = vmul.f32 %v3705_v52, %v3684_v36  ;;  %v967_v21 = vsel %vm3739_vm5, %v3682_v35, %v963_v62  ;;  %vm995_vm8 = vweird.f32 %v3705_v52 }
  0xf3   : > { %3034 = vrcp.f32 %v3708_v54  ;;  %v3729_v4 = vadd.f32 1.0, %v3029_v56  ;;  %v972_v40 = vsel %vm3725_vm3, %v971_v8, %v967_v21  ;;  %vm3785_vm11 = vmor %vm994_vm7, %vm995_vm8  ;;  %v982_v44 = vsel %vm3772_vm10, %v3687_v38, %v978_v14 }
  0xf4   : > { %v3718_v61 = vpop.eup %3030  ;;  %3036 = vpow2.f32 %v2657_v55  ;;  %v991_v6 = vsub.f32 1.0, %v990_v58  ;;  %v1919_v58 = vmul.f32 %v972_v40, %v3653_v7  ;;  %v987_v59 = vsel %vm3744_vm6, %v986_v41, %v982_v44 }
  0xf5   : > { %v544_v5 = vpop.f32.mrf.mxu0  ;;  %v1005_v12 = vmul.f32 %v3718_v61, %v3694_v43  ;;  %3038 = vrcp.f32 %v3729_v4  ;;  %vm1010_vm9 = vweird.f32 %v3718_v61  ;;  %v1016_v43 = vor.u32 1.1754944e-38, %v1015_v31 }
  0xf6   : > { %v3733_v10 = vadd.f32 %v544_v5, %v3647_v1  ;;  %v633_v11 = vpop.f32.mrf.mxu1  ;;  %v992_v23 = vmul.f32 %v3705_v52, %v991_v6  ;;  %vm1011_vm14 = vmor %vm1009_vm12, %vm1010_vm9  ;;  %v1920_v6 = vmul.f32 %v987_v59, %v3656_v9  ;;  %vm1024_vm1 = vweird.f32 %v3708_v54 }
  0xf7   : > { %v1006_v24 = vsub.f32 1.0, %v1005_v12  ;;  %v3762_v28 = vadd.f32 %v633_v11, %v3649_v2  ;;  %v1028_v29 = vand.u32 2147483647, %v3708_v54  ;;  %v1030_v31 = vand.u32 2147483648, %v3708_v54 }
  0xf8   : > { %v3033_v20 = vpop.eup %3032  ;;  %v2658_v22 = vmul.f32 -1.442695, %v3733_v10  ;;  %583 = vmatmul.bf16.gmra.mxu0 %v2794_v0  ;;  %v993_v37 = vadd.f32 %v3705_v52, %v992_v23  ;;  %vm1039_vm9 = vweird.f32 %v3729_v4 }
  0xf9   : > { %v3756_v25 = vpop.eup %3034  ;;  %v3759_v26 = vadd.f32 1.0, %v3033_v20  ;;  %672 = vmatmul.bf16.gmra.mxu1 %v2794_v0  ;;  %v1007_v39 = vmul.f32 %v3718_v61, %v1006_v24  ;;  %v2659_v46 = vmul.f32 -1.442695, %v3762_v28  ;;  %vm1029_vm6 = vcmp.eq.f32.partialorder %v1028_v29, 8.507059e+37 }
  0xfa   : > { %3040 = vpow2.f32 %v2658_v22  ;;  %v3037_v33 = vpop.eup %3036  ;;  %v1020_v35 = vmul.f32 %v3756_v25, %v3708_v54  ;;  %v997_v49 = vsel %vm3785_vm11, %v3705_v52, %v993_v37  ;;  %vm1025_vm0 = vweird.f32 %v3756_v25 }
  0xfb   : > { %3042 = vrcp.f32 %v3759_v26  ;;  %v1008_v36 = vadd.f32 %v3718_v61, %v1007_v39  ;;  %v3798_v50 = vadd.f32 1.0, %v3037_v33  ;;  %v3802_v53 = vpop.eup %3038  ;;  %v1002_v56 = vsel %vm999_vm13, %v1001_v42, %v997_v49  ;;  %vm3855_vm4 = vmor %vm1024_vm1, %vm1025_vm0 }
  0xfc   : > { %v1021_v38 = vsub.f32 1.0, %v1020_v35  ;;  %v1921_v60 = vmul.f32 %v1002_v56, %v3661_v17  ;;  %3044 = vpow2.f32 %v2659_v46  ;;  %v1035_v11 = vmul.f32 %v3802_v53, %v3729_v4 }
  0xfd   : > { %v546_v47 = vpop.f32.mrf.mxu0  ;;  %v1012_v52 = vsel %vm1011_vm14, %v3718_v61, %v1008_v36  ;;  %3046 = vrcp.f32 %v3798_v50  ;;  %vm1054_vm2 = vweird.f32 %v3759_v26  ;;  %v1060_v41 = vand.u32 2147483648, %v3759_v26 }
  0xfe   : > { %v635_v51 = vpop.f32.mrf.mxu1  ;;  %v3805_v55 = vadd.f32 %v546_v47, %v3647_v1  ;;  %v1017_v62 = vsel %vm1014_vm15, %v1016_v43, %v1012_v52  ;;  %v1983_v61 = vpack.c.bf16 %v1921_v60, %v1919_v58  ;;  %v1022_v17 = vmul.f32 %v3756_v25, %v1021_v38 }
  0xff   : > { %v1922_v5 = vmul.f32 %v1017_v62, %v3664_v19  ;;  %v3824_v8 = vadd.f32 %v635_v51, %v3649_v2  ;;  %v2795_v19 = vld [vmem:[%s3625_s11 + $0x58] sm:$0xff]  ;;  %v1036_v21 = vsub.f32 1.0, %v1035_v11  ;;  %v1058_v46 = vand.u32 2147483647, %v3759_v26 }
 0x100   : > { %v3041_v57 = vpop.eup %3040  ;;  %v2660_v3 = vmul.f32 -1.442695, %v3805_v55  ;;  %2155 = vmatmul.bf16.vlgmr.msra.gmra.mxu2 %v1983_v61  ;;  %v1023_v9 = vadd.f32 %v3756_v25, %v1022_v17  ;;  %v1031_v47 = vor.u32 1.1754944e-38, %v1030_v31  ;;  %v1061_v52 = vor.u32 1.1754944e-38, %v1060_v41 }
 0x101   : > { %v3812_v63 = vpop.eup %3042  ;;  %v3814_v0 = vadd.f32 1.0, %v3041_v57  ;;  %v1984_v12 = vpack.c.bf16 %v1922_v5, %v1920_v6  ;;  %v2661_v18 = vmul.f32 -1.442695, %v3824_v8  ;;  %v1037_v44 = vmul.f32 %v3802_v53, %v1036_v21 }
 0x102   : > { %v1050_v7 = vmul.f32 %v3812_v63, %v3759_v26  ;;  %v3045_v16 = vpop.eup %3044  ;;  %vm1055_vm3 = vweird.f32 %v3812_v63  ;;  %v1027_v42 = vsel %vm3855_vm4, %v3756_v25, %v1023_v9  ;;  %vm1040_vm7 = vweird.f32 %v3802_v53 }
 0x103   : > { %3048 = vrcp.f32 %v3814_v0  ;;  %2244 = vmatmul.bf16.vlgmr.msra.gmra.mxu3 %v1984_v12  ;;  %v3833_v20 = vpop.eup %3046  ;;  %v3848_v34 = vadd.f32 1.0, %v3045_v16  ;;  %vm3876_vm5 = vmor %vm1054_vm2, %vm1055_vm3  ;;  %v1032_v56 = vsel %vm1029_vm6, %v1031_v47, %v1027_v42  ;;  %v1038_v58 = vadd.f32 %v3802_v53, %v1037_v44 }
 0x104   : > { %3050 = vpow2.f32 %v2660_v3  ;;  %v1051_v14 = vsub.f32 1.0, %v1050_v7  ;;  %v1065_v27 = vmul.f32 %v3833_v20, %v3798_v50  ;;  %v1045_v26 = vand.u32 2147483648, %v3729_v4  ;;  %vm3893_vm10 = vmor %vm1039_vm9, %vm1040_vm7 }
 0x105   : > { %v549_v13 = vpop.f32.mrf.mxu0  ;;  %3052 = vpow2.f32 %v2661_v18  ;;  %vm1059_vm8 = vcmp.eq.f32.partialorder %v1058_v46, 8.507059e+37  ;;  %v1923_v5 = vmul.f32 %v1032_v56, %v3676_v30  ;;  %v1043_v61 = vand.u32 2147483647, %v3729_v4  ;;  %v2796_v30 = vld [vmem:[%s3625_s11 + $0x60] sm:$0xff] }
 0x106   : > { %v638_v15 = vpop.f32.mrf.mxu1  ;;  %v3836_v22 = vadd.f32 %v549_v13, %v3647_v1  ;;  %v1052_v24 = vmul.f32 %v3812_v63, %v1051_v14  ;;  %v1066_v57 = vsub.f32 1.0, %v1065_v27  ;;  %v1042_v11 = vsel %vm3893_vm10, %v3802_v53, %v1038_v58 }
 0x107   : > { %v3839_v23 = vadd.f32 %v638_v15, %v3649_v2  ;;  %vm1070_vm11 = vweird.f32 %v3833_v20  ;;  %vm1044_vm12 = vcmp.eq.f32.partialorder %v1043_v61, 8.507059e+37  ;;  %v1088_v9 = vand.u32 2147483647, %v3814_v0 }
 0x108   : > { %588 = vmatmul.bf16.gmra.mxu0 %v2795_v19  ;;  %v2662_v35 = vmul.f32 -1.442695, %v3836_v22  ;;  %v1053_v54 = vadd.f32 %v3812_v63, %v1052_v24  ;;  %v1090_v53 = vand.u32 2147483648, %v3814_v0  ;;  %vm1069_vm13 = vweird.f32 %v3798_v50 }
 0x109   : > { %677 = vmatmul.bf16.gmra.mxu1 %v2795_v19  ;;  %v3846_v33 = vpop.eup %3048  ;;  %v2663_v37 = vmul.f32 -1.442695, %v3839_v23  ;;  %v1046_v19 = vor.u32 1.1754944e-38, %v1045_v26  ;;  %vm3927_vm15 = vmor %vm1069_vm13, %vm1070_vm11  ;;  %v1075_v40 = vand.u32 2147483648, %v3798_v50  ;;  %vm1084_vm1 = vweird.f32 %v3814_v0 }
 0x10a   : > { %v3051_v39 = vpop.eup %3050  ;;  %3054 = vpow2.f32 %v2662_v35  ;;  %v1080_v49 = vmul.f32 %v3846_v33, %v3814_v0  ;;  %v1057_v38 = vsel %vm3876_vm5, %v3812_v63, %v1053_v54  ;;  %v1067_v63 = vmul.f32 %v3833_v20, %v1066_v57 }
 0x10b   : > { %v3870_v36 = vadd.f32 1.0, %v3051_v39  ;;  %3056 = vpow2.f32 %v2663_v37  ;;  %v3053_v59 = vpop.eup %3052  ;;  %v1062_v62 = vsel %vm1059_vm8, %v1061_v52, %v1057_v38  ;;  %v1047_v29 = vsel %vm1044_vm12, %v1046_v19, %v1042_v11 }
 0x10c   : > { %3058 = vrcp.f32 %v3848_v34  ;;  %v1081_v60 = vsub.f32 1.0, %v1080_v49  ;;  %v1925_v7 = vmul.f32 %v1062_v62, %v3698_v45  ;;  %v3900_v12 = vadd.f32 1.0, %v3053_v59 }
 0x10d   : > { %v551_v51 = vpop.f32.mrf.mxu0  ;;  %3060 = vrcp.f32 %v3870_v36  ;;  %v1068_v45 = vadd.f32 %v3833_v20, %v1067_v63  ;;  %v1073_v35 = vand.u32 2147483647, %v3798_v50  ;;  %vm1085_vm14 = vweird.f32 %v3846_v33 }
 0x10e   : > { %v640_v25 = vpop.f32.mrf.mxu1  ;;  %v1985_v13 = vpack.c.bf16 %v1925_v7, %v1923_v5  ;;  %v1082_v4 = vmul.f32 %v3846_v33, %v1081_v60  ;;  %v3913_v18 = vadd.f32 %v551_v51, %v3647_v1  ;;  %3062 = vrcp.f32 %v3900_v12  ;;  %vm3958_vm3 = vmor %vm1084_vm1, %vm1085_vm14 }
 0x10f   : > { %v3935_v41 = vadd.f32 %v640_v25, %v3649_v2  ;;  %v1072_v27 = vsel %vm3927_vm15, %v3833_v20, %v1068_v45  ;;  %v1076_v44 = vor.u32 1.1754944e-38, %v1075_v40  ;;  %vm1074_vm0 = vcmp.eq.f32.partialorder %v1073_v35, 8.507059e+37  ;;  %v2797_v25 = vld [vmem:[%s3625_s11 + $0x68] sm:$0xff] }
 0x110   : > { %v3055_v3 = vpop.eup %3054  ;;  %2160 = vmatmul.bf16.gmra.mxu2 %v1985_v13  ;;  %v1083_v54 = vadd.f32 %v3846_v33, %v1082_v4  ;;  %v2664_v42 = vmul.f32 -1.442695, %v3913_v18  ;;  %vm3951_vm2 = vcmp.eq.f32.partialorder %v1088_v9, 8.507059e+37  ;;  %v1091_v49 = vor.u32 1.1754944e-38, %v1090_v53 }
 0x111   : > { %v3057_v17 = vpop.eup %3056  ;;  %v3906_v15 = vadd.f32 1.0, %v3055_v3  ;;  %v1077_v51 = vsel %vm1074_vm0, %v1076_v44, %v1072_v27  ;;  %v1924_v43 = vmul.f32 %v1047_v29, %v3679_v32  ;;  %v2665_v56 = vmul.f32 -1.442695, %v3935_v41 }
 0x112   : > { %v3903_v14 = vpop.eup %3058  ;;  %v3917_v31 = vadd.f32 1.0, %v3057_v17  ;;  %v1926_v52 = vmul.f32 %v1077_v51, %v3701_v48  ;;  %v1087_v58 = vsel %vm3958_vm3, %v3846_v33, %v1083_v54  ;;  %v1118_v5 = vand.u32 2147483647, %v3870_v36 }
 0x113   : > { %v3915_v24 = vpop.eup %3060  ;;  %v1095_v37 = vmul.f32 %v3903_v14, %v3848_v34  ;;  %3064 = vrcp.f32 %v3906_v15  ;;  %v1120_v61 = vand.u32 2147483648, %v3870_v36  ;;  %v1092_v6 = vsel %vm3951_vm2, %v1091_v49, %v1087_v58 }
 0x114   : > { %v1110_v50 = vmul.f32 %v3915_v24, %v3870_v36  ;;  %3066 = vrcp.f32 %v3917_v31  ;;  %v3964_v57 = vpop.eup %3062  ;;  %v1986_v62 = vpack.c.bf16 %v1926_v52, %v1924_v43  ;;  %vm1115_vm4 = vweird.f32 %v3915_v24 }
 0x115   : > { %v554_v16 = vpop.f32.mrf.mxu0  ;;  %v1096_v38 = vsub.f32 1.0, %v1095_v37  ;;  %3068 = vpow2.f32 %v2664_v42  ;;  %vm1114_vm5 = vweird.f32 %v3870_v36  ;;  %v1125_v4 = vmul.f32 %v3964_v57, %v3900_v12 }
 0x116   : > { %v643_v21 = vpop.f32.mrf.mxu1  ;;  %v3942_v46 = vadd.f32 %v554_v16, %v3647_v1  ;;  %v1111_v59 = vsub.f32 1.0, %v1110_v50  ;;  %3070 = vpow2.f32 %v2665_v56  ;;  %2249 = vmatmul.bf16.gmra.mxu3 %v1986_v62  ;;  %vm1116_vm6 = vmor %vm1114_vm5, %vm1115_vm4  ;;  %vm1119_vm7 = vcmp.eq.f32.partialorder %v1118_v5, 8.507059e+37 }
 0x117   : > { %v3948_v47 = vadd.f32 %v643_v21, %v3649_v2  ;;  %v1097_v17 = vmul.f32 %v3903_v14, %v1096_v38  ;;  %vm1100_vm8 = vweird.f32 %v3903_v14  ;;  %v1103_v29 = vand.u32 2147483647, %v3848_v34 }
 0x118   : > { %593 = vmatmul.bf16.gmra.mxu0 %v2796_v30  ;;  %v2666_v32 = vmul.f32 -1.442695, %v3942_v46  ;;  %v1112_v33 = vmul.f32 %v3915_v24, %v1111_v59  ;;  %v1105_v35 = vand.u32 2147483648, %v3848_v34  ;;  %v1927_v40 = vmul.f32 %v1092_v6, %v3733_v10 }
 0x119   : > { %682 = vmatmul.bf16.gmra.mxu1 %v2796_v30  ;;  %v3970_v60 = vpop.eup %3064  ;;  %v2667_v63 = vmul.f32 -1.442695, %v3948_v47  ;;  %v1121_v30 = vor.u32 1.1754944e-38, %v1120_v61  ;;  %v1098_v36 = vadd.f32 %v3903_v14, %v1097_v17  ;;  %vm1099_vm9 = vweird.f32 %v3848_v34 }
 0x11a   : > { %v3983_v7 = vpop.eup %3066  ;;  %v1140_v11 = vmul.f32 %v3970_v60, %v3906_v15  ;;  %3072 = vpow2.f32 %v2666_v32  ;;  %v1113_v19 = vadd.f32 %v3915_v24, %v1112_v33  ;;  %v1126_v54 = vsub.f32 1.0, %v1125_v4  ;;  %vm4007_vm10 = vmor %vm1099_vm9, %vm1100_vm8 }
 0x11b   : > { %3074 = vpow2.f32 %v2667_v63  ;;  %v3069_v45 = vpop.eup %3068  ;;  %v1155_v16 = vmul.f32 %v3983_v7, %v3917_v31  ;;  %v1102_v10 = vsel %vm4007_vm10, %v3903_v14, %v1098_v36  ;;  %vm1104_vm11 = vcmp.eq.f32.partialorder %v1103_v29, 8.507059e+37 }
 0x11c   : > { %v1117_v53 = vsel %vm1116_vm6, %v3915_v24, %v1113_v19  ;;  %v1141_v37 = vsub.f32 1.0, %v1140_v11  ;;  %v3071_v39 = vpop.eup %3070  ;;  %v4011_v44 = vadd.f32 1.0, %v3069_v45  ;;  %v1106_v34 = vor.u32 1.1754944e-38, %v1105_v35 }
 0x11d   : > { %v556_v0 = vpop.f32.mrf.mxu0  ;;  %v1122_v21 = vsel %vm1119_vm7, %v1121_v30, %v1117_v53  ;;  %v1156_v42 = vsub.f32 1.0, %v1155_v16  ;;  %vm1144_vm12 = vweird.f32 %v3906_v15  ;;  %v1148_v38 = vand.u32 2147483647, %v3906_v15 }
 0x11e   : > { %v645_v26 = vpop.f32.mrf.mxu1  ;;  %v3974_v3 = vadd.f32 %v556_v0, %v3647_v1  ;;  %v1929_v50 = vmul.f32 %v1122_v21, %v3805_v55  ;;  %v1142_v51 = vmul.f32 %v3970_v60, %v1141_v37  ;;  %v1127_v55 = vmul.f32 %v3964_v57, %v1126_v54 }
 0x11f   : > { %v3978_v48 = vadd.f32 %v645_v26, %v3649_v2  ;;  %v1107_v0 = vsel %vm1104_vm11, %v1106_v34, %v1102_v10  ;;  %v1157_v58 = vmul.f32 %v3983_v7, %v1156_v42  ;;  %v1150_v26 = vand.u32 2147483648, %v3906_v15 }
 0x120   : > { %v2668_v13 = vmul.f32 -1.442695, %v3974_v3  ;;  %v3073_v24 = vpop.eup %3072  ;;  %v1987_v43 = vpack.c.bf16 %v1929_v50, %v1927_v40  ;;  %vm1159_vm13 = vweird.f32 %v3917_v31  ;;  %v4030_v59 = vadd.f32 1.0, %v3071_v39 }
 0x121   : > { %v2669_v9 = vmul.f32 -1.442695, %v3978_v48  ;;  %v3075_v49 = vpop.eup %3074  ;;  %v4021_v56 = vadd.f32 1.0, %v3073_v24  ;;  %vm1130_vm14 = vweird.f32 %v3964_v57  ;;  %v1143_v63 = vadd.f32 %v3970_v60, %v1142_v51 }
 0x122   : > { %3076 = vpow2.f32 %v2668_v13  ;;  %v4026_v14 = vadd.f32 1.0, %v3075_v49  ;;  %2165 = vmatmul.bf16.gmra.mxu2 %v1987_v43  ;;  %vm1145_vm15 = vweird.f32 %v3970_v60  ;;  %vm1160_vm0 = vweird.f32 %v3983_v7 }
 0x123   : > { %3078 = vpow2.f32 %v2669_v9  ;;  %vm1129_vm1 = vweird.f32 %v3900_v12  ;;  %v1128_v33 = vadd.f32 %v3964_v57, %v1127_v55  ;;  %v1133_v5 = vand.u32 2147483647, %v3900_v12  ;;  %vm4067_vm3 = vmor %vm1144_vm12, %vm1145_vm15 }
 0x124   : > { %3080 = vrcp.f32 %v4011_v44  ;;  %v1135_v61 = vand.u32 2147483648, %v3900_v12  ;;  %v1158_v6 = vadd.f32 %v3983_v7, %v1157_v58  ;;  %vm4045_vm2 = vmor %vm1129_vm1, %vm1130_vm14  ;;  %v1928_v16 = vmul.f32 %v1107_v0, %v3762_v28 }
 0x125   : > { %v559_v20 = vpop.f32.mrf.mxu0  ;;  %3082 = vrcp.f32 %v4021_v56  ;;  %v1132_v30 = vsel %vm4045_vm2, %v3964_v57, %v1128_v33  ;;  %v1165_v53 = vand.u32 2147483648, %v3917_v31  ;;  %vm1134_vm4 = vcmp.eq.f32.partialorder %v1133_v5, 8.507059e+37  ;;  %vm4077_vm5 = vmor %vm1159_vm13, %vm1160_vm0 }
 0x126   : > { %v648_v52 = vpop.f32.mrf.mxu1  ;;  %3084 = vrcp.f32 %v4026_v14  ;;  %v4050_v19 = vadd.f32 %v559_v20, %v3647_v1  ;;  %v1136_v12 = vor.u32 1.1754944e-38, %v1135_v61  ;;  %v1151_v21 = vor.u32 1.1754944e-38, %v1150_v26 }
 0x127   : > { %v4058_v4 = vadd.f32 %v648_v52, %v3649_v2  ;;  %v1163_v15 = vand.u32 2147483647, %v3917_v31  ;;  %3086 = vrcp.f32 %v4030_v59  ;;  %v1147_v35 = vsel %vm4067_vm3, %v3970_v60, %v1143_v63 }
 0x128   : > { %598 = vmatmul.bf16.gmra.mxu0 %v2797_v25  ;;  %v3077_v32 = vpop.eup %3076  ;;  %v2670_v57 = vmul.f32 -1.442695, %v4050_v19  ;;  %v1137_v29 = vsel %vm1134_vm4, %v1136_v12, %v1132_v30  ;;  %v1162_v37 = vsel %vm4077_vm5, %v3983_v7, %v1158_v6  ;;  %vm1149_vm6 = vcmp.eq.f32.partialorder %v1148_v38, 8.507059e+37 }
 0x129   : > { %687 = vmatmul.bf16.gmra.mxu1 %v2797_v25  ;;  %v3079_v62 = vpop.eup %3078  ;;  %v4043_v17 = vadd.f32 1.0, %v3077_v32  ;;  %v1930_v39 = vmul.f32 %v1137_v29, %v3824_v8  ;;  %v2671_v31 = vmul.f32 -1.442695, %v4058_v4  ;;  %v1166_v7 = vor.u32 1.1754944e-38, %v1165_v53 }
 0x12a   : > { %v4052_v13 = vadd.f32 1.0, %v3079_v62  ;;  %v4060_v45 = vpop.eup %3080  ;;  %v1152_v8 = vsel %vm1149_vm6, %v1151_v21, %v1147_v35  ;;  %vm1164_vm7 = vcmp.eq.f32.partialorder %v1163_v15, 8.507059e+37  ;;  %v1210_v51 = vand.u32 2147483648, %v4021_v56 }
 0x12b   : > { %3088 = vrcp.f32 %v4043_v17  ;;  %v4091_v40 = vpop.eup %3082  ;;  %v1170_v60 = vmul.f32 %v4060_v45, %v4011_v44  ;;  %v1988_v42 = vpack.c.bf16 %v1930_v39, %v1928_v16  ;;  %v1167_v50 = vsel %vm1164_vm7, %v1166_v7, %v1162_v37  ;;  %v2798_v7 = vld [vmem:[%s3625_s11 + $0x70] sm:$0xff] }
 0x12c   : > { %3090 = vrcp.f32 %v4052_v13  ;;  %v4100_v27 = vpop.eup %3084  ;;  %v1200_v20 = vmul.f32 %v4091_v40, %v4021_v56  ;;  %v1225_v55 = vand.u32 2147483648, %v4026_v14  ;;  %v4120_v58 = vmul.f32 %v1152_v8, %v3836_v22 }
 0x12d   : > { %v561_v36 = vpop.f32.mrf.mxu0  ;;  %3092 = vpow2.f32 %v2670_v57  ;;  %2254 = vmatmul.bf16.gmra.mxu3 %v1988_v42  ;;  %v4108_v34 = vpop.eup %3086  ;;  %v1215_v43 = vmul.f32 %v4100_v27, %v4026_v14  ;;  %v1171_v25 = vsub.f32 1.0, %v1170_v60  ;;  %v4124_v62 = vmul.f32 %v1167_v50, %v3839_v23 }
 0x12e   : > { %v4096_v54 = vadd.f32 %v561_v36, %v3647_v1  ;;  %v650_v24 = vpop.f32.mrf.mxu1  ;;  %3094 = vpow2.f32 %v2671_v31  ;;  %v1201_v63 = vsub.f32 1.0, %v1200_v20  ;;  %v1208_v33 = vand.u32 2147483647, %v4021_v56 }
 0x12f   : > { %v4106_v10 = vadd.f32 %v650_v24, %v3649_v2  ;;  %v1172_v32 = vmul.f32 %v4060_v45, %v1171_v25  ;;  %v4127_v5 = vor.u32 1.1754944e-38, %v1210_v51  ;;  %v1216_v61 = vsub.f32 1.0, %v1215_v43 }
 0x130   : > { %v2672_v49 = vmul.f32 -1.442695, %v4096_v54  ;;  %v1223_v6 = vand.u32 2147483647, %v4026_v14  ;;  %v4132_v22 = vor.u32 1.1754944e-38, %v1225_v55  ;;  %vm1175_vm8 = vweird.f32 %v4060_v45 }
 0x131   : > { %v4113_v38 = vpop.eup %3088  ;;  %v2673_v52 = vmul.f32 -1.442695, %v4106_v10  ;;  %v1173_v23 = vadd.f32 %v4060_v45, %v1172_v32  ;;  %vm1204_vm9 = vweird.f32 %v4021_v56  ;;  %v1238_v9 = vand.u32 2147483647, %v4043_v17 }
 0x132   : > { %3096 = vpow2.f32 %v2672_v49  ;;  %v4117_v0 = vpop.eup %3090  ;;  %v1230_v11 = vmul.f32 %v4113_v38, %v4043_v17  ;;  %v1180_v57 = vand.u32 2147483648, %v4011_v44  ;;  %v1185_v36 = vmul.f32 %v4108_v34, %v4030_v59 }
 0x133   : > { %v3093_v26 = vpop.eup %3092  ;;  %3098 = vpow2.f32 %v2673_v52  ;;  %v1245_v30 = vmul.f32 %v4117_v0, %v4052_v13  ;;  %v1202_v28 = vmul.f32 %v4091_v40, %v1201_v63  ;;  %vm1219_vm10 = vweird.f32 %v4026_v14 }
 0x134   : > { %v3095_v16 = vpop.eup %3094  ;;  %v4142_v53 = vadd.f32 1.0, %v3093_v26  ;;  %v1240_v15 = vand.u32 2147483648, %v4043_v17  ;;  %vm1174_vm11 = vweird.f32 %v4011_v44  ;;  %v1178_v29 = vand.u32 2147483647, %v4011_v44 }
 0x135   : > { %v4138_v12 = vpop.f32.mrf.mxu0  ;;  %v1217_v37 = vmul.f32 %v4100_v27, %v1216_v61  ;;  %v1231_v39 = vsub.f32 1.0, %v1230_v11  ;;  %v1253_v31 = vand.u32 2147483647, %v4052_v13  ;;  %vm4158_vm12 = vmor %vm1174_vm11, %vm1175_vm8  ;;  %v1246_v8 = vsub.f32 1.0, %v1245_v30 }
 0x136   : > { %v653_v35 = vpop.f32.mrf.mxu1  ;;  %v4163_v50 = vadd.f32 1.0, %v3095_v16  ;;  %v1177_v44 = vsel %vm4158_vm12, %v4060_v45, %v1173_v23  ;;  %v1186_v20 = vsub.f32 1.0, %v1185_v36  ;;  %vm1205_vm13 = vweird.f32 %v4091_v40 }
 0x137   : > { %vm4169_vm14 = vcmp.eq.f32.partialorder %v1208_v33, 8.507059e+37  ;;  %vm1234_vm15 = vweird.f32 %v4043_v17  ;;  %v1255_v51 = vand.u32 2147483648, %v4052_v13  ;;  %3100 = vrcp.f32 %v4142_v53  ;;  %vm4199_vm6 = vmor %vm1204_vm9, %vm1205_vm13 }
 0x138   : > { %v3097_v21 = vpop.eup %3096  ;;  %v1181_v43 = vor.u32 1.1754944e-38, %v1180_v57  ;;  %603 = vmatmul.bf16.gmra.mxu0 %v2798_v7  ;;  %v1203_v25 = vadd.f32 %v4091_v40, %v1202_v28  ;;  %vm1220_vm0 = vweird.f32 %v4100_v27  ;;  %vm4178_vm1 = vcmp.eq.f32.partialorder %v1223_v6, 8.507059e+37 }
 0x139   : > { %v4154_v24 = vadd.f32 1.0, %v3097_v21  ;;  %v3099_v42 = vpop.eup %3098  ;;  %692 = vmatmul.bf16.gmra.mxu1 %v2798_v7  ;;  %vm1249_vm2 = vweird.f32 %v4052_v13  ;;  %vm1179_vm3 = vcmp.eq.f32.partialorder %v1178_v29, 8.507059e+37  ;;  %v1232_v52 = vmul.f32 %v4113_v38, %v1231_v39  ;;  %vm4220_vm9 = vmor %vm1219_vm10, %vm1220_vm0 }
 0x13a   : > { %v4183_v55 = vadd.f32 1.0, %v3099_v42  ;;  %v1182_v32 = vsel %vm1179_vm3, %v1181_v43, %v1177_v44  ;;  %v1187_v26 = vmul.f32 %v4108_v34, %v1186_v20  ;;  %v1218_v63 = vadd.f32 %v4100_v27, %v1217_v37 }
 0x13b   : > { %3102 = vrcp.f32 %v4154_v24  ;;  %v1247_v33 = vmul.f32 %v4117_v0, %v1246_v8  ;;  %v1195_v61 = vand.u32 2147483648, %v4030_v59  ;;  %vm1235_vm4 = vweird.f32 %v4113_v38 }
 0x13c   : > { %3104 = vrcp.f32 %v4163_v50  ;;  %v1241_v6 = vor.u32 1.1754944e-38, %v1240_v15  ;;  %vm1190_vm5 = vweird.f32 %v4108_v34  ;;  %v1193_v11 = vand.u32 2147483647, %v4030_v59  ;;  %vm4253_vm13 = vmor %vm1234_vm15, %vm1235_vm4 }
 0x13d   : > { %vm4203_vm7 = vcmp.eq.f32.partialorder %v1238_v9, 8.507059e+37  ;;  %vm1250_vm8 = vweird.f32 %v4117_v0  ;;  %3106 = vrcp.f32 %v4183_v55  ;;  %v1933_v16 = vmul.f32 %v1182_v32, %v3913_v18  ;;  %v566_v36 = vpop.f32.mrf.mxu0  ;;  %v4211_v28 = vpop.eup %3100 }
 0x13e   : > { %v1188_v57 = vadd.f32 %v4108_v34, %v1187_v26  ;;  %v655_v21 = vpop.f32.mrf.mxu1  ;;  %v1207_v56 = vsel %vm4199_vm6, %v4091_v40, %v1203_v25  ;;  %v1233_v18 = vadd.f32 %v4113_v38, %v1232_v52  ;;  %vm1189_vm11 = vweird.f32 %v4030_v59 }
 0x13f   : > { %v4228_v15 = vadd.f32 %v4138_v12, %v3647_v1  ;;  %v1222_v40 = vsel %vm4220_vm9, %v4100_v27, %v1218_v63  ;;  %v1248_v29 = vadd.f32 %v4117_v0, %v1247_v33  ;;  %v1989_v14 = vpack.c.bf16 %v1933_v16, %v4120_v58  ;;  %vm1191_vm10 = vmor %vm1189_vm11, %vm1190_vm5 }
 0x140   : > { %v1196_v37 = vor.u32 1.1754944e-38, %v1195_v61  ;;  %v1192_v59 = vsel %vm1191_vm10, %v4108_v34, %v1188_v57  ;;  %vm1194_vm12 = vcmp.eq.f32.partialorder %v1193_v11, 8.507059e+37  ;;  %v4242_v60 = vadd.f32 %v653_v35, %v3649_v2 }
 0x141   : > { %v4237_v39 = vpop.eup %3102  ;;  %v2674_v12 = vmul.f32 -1.442695, %v4228_v15  ;;  %v1212_v27 = vsel %vm4169_vm14, %v4127_v5, %v1207_v56  ;;  %v1260_v34 = vmul.f32 %v4211_v28, %v4142_v53  ;;  %2170 = vmatmul.bf16.gmra.mxu2 %v1989_v14  ;;  %v4260_v42 = vadd.f32 %v566_v36, %v3647_v1  ;;  %vm4272_vm14 = vmor %vm1249_vm2, %vm1250_vm8 }
 0x142   : > { %v4244_v7 = vpop.eup %3104  ;;  %v1197_v35 = vsel %vm1194_vm12, %v1196_v37, %v1192_v59  ;;  %v1227_v5 = vsel %vm4178_vm1, %v4132_v22, %v1222_v40  ;;  %v1237_v17 = vsel %vm4253_vm13, %v4113_v38, %v1233_v18  ;;  %vm4278_vm15 = vcmp.eq.f32.partialorder %v1253_v31, 8.507059e+37 }
 0x143   : > { %v1256_v20 = vor.u32 1.1754944e-38, %v1255_v51  ;;  %v4282_v22 = vpop.eup %3106  ;;  %v1252_v38 = vsel %vm4272_vm14, %v4117_v0, %v1248_v29  ;;  %v1290_v49 = vmul.f32 %v4237_v39, %v4154_v24  ;;  %v1934_v43 = vmul.f32 %v1197_v35, %v3935_v41 }
 0x144   : > { %3108 = vpow2.f32 %v2674_v12  ;;  %v4291_v13 = vmul.f32 %v1212_v27, %v3942_v46  ;;  %v1275_v31 = vmul.f32 %v4244_v7, %v4163_v50  ;;  %v2675_v51 = vmul.f32 -1.442695, %v4242_v60 }
 0x145   : > { %v2676_v25 = vmul.f32 -1.442695, %v4260_v42  ;;  %v4298_v45 = vmul.f32 %v1227_v5, %v3948_v47  ;;  %v1261_v0 = vsub.f32 1.0, %v1260_v34  ;;  %v1990_v52 = vpack.c.bf16 %v1934_v43, %v4124_v62  ;;  %v569_v32 = vpop.f32.mrf.mxu0  ;;  %v2799_v47 = vld [vmem:[%s3625_s11 + $0x78] sm:$0xff] }
 0x146   : > { %v4302_v41 = vadd.f32 %v655_v21, %v3649_v2  ;;  %v658_v26 = vpop.f32.mrf.mxu1  ;;  %v1242_v46 = vsel %vm4203_vm7, %v1241_v6, %v1237_v17  ;;  %v1257_v63 = vsel %vm4278_vm15, %v1256_v20, %v1252_v38  ;;  %v1305_v33 = vmul.f32 %v4282_v22, %v4183_v55 }
 0x147   : > { %3110 = vpow2.f32 %v2675_v51  ;;  %v1270_v61 = vand.u32 2147483648, %v4142_v53  ;;  %v1291_v11 = vsub.f32 1.0, %v1290_v49  ;;  %2259 = vmatmul.bf16.gmra.mxu3 %v1990_v52  ;;  %v1268_v30 = vand.u32 2147483647, %v4142_v53 }
 0x148   : > { %3112 = vpow2.f32 %v2676_v25  ;;  %v2677_v62 = vmul.f32 -1.442695, %v4302_v41  ;;  %v1276_v16 = vsub.f32 1.0, %v1275_v31  ;;  %v4315_v6 = vadd.f32 %v569_v32, %v3647_v1  ;;  %608 = vmatmul.bf16.gmra.mxu0 %v2799_v47 }
 0x149   : > { %v4318_v23 = vadd.f32 %v658_v26, %v3649_v2  ;;  %v1937_v36 = vmul.f32 %v1242_v46, %v3974_v3  ;;  %v4322_v21 = vmul.f32 %v1257_v63, %v3978_v48  ;;  %v1262_v56 = vmul.f32 %v4211_v28, %v1261_v0  ;;  %697 = vmatmul.bf16.gmra.mxu1 %v2799_v47 }
 0x14a   : > { %v3109_v57 = vpop.eup %3108  ;;  %3114 = vpow2.f32 %v2677_v62  ;;  %vm1264_vm0 = vweird.f32 %v4142_v53  ;;  %v1306_v9 = vsub.f32 1.0, %v1305_v33  ;;  %v2678_v40 = vmul.f32 -1.442695, %v4315_v6 }
 0x14b   : > { %v4326_v18 = vadd.f32 1.0, %v3109_v57  ;;  %v1271_v29 = vor.u32 1.1754944e-38, %v1270_v61  ;;  %vm1279_vm1 = vweird.f32 %v4163_v50  ;;  %v1292_v14 = vmul.f32 %v4237_v39, %v1291_v11 }
 0x14c   : > { %v2679_v3 = vmul.f32 -1.442695, %v4318_v23  ;;  %vm1265_vm2 = vweird.f32 %v4211_v28  ;;  %vm4333_vm3 = vcmp.eq.f32.partialorder %v1268_v30, 8.507059e+37  ;;  %v1277_v59 = vmul.f32 %v4244_v7, %v1276_v16 }
 0x14d   : > { %v3111_v48 = vpop.eup %3110  ;;  %v1283_v12 = vand.u32 2147483647, %v4163_v50  ;;  %3116 = vrcp.f32 %v4326_v18  ;;  %v1263_v58 = vadd.f32 %v4211_v28, %v1262_v56  ;;  %v1300_v34 = vand.u32 2147483648, %v4154_v24  ;;  %v571_v17 = vpop.f32.mrf.mxu0  ;;  %vm4364_vm7 = vmor %vm1264_vm0, %vm1265_vm2 }
 0x14e   : > { %v3113_v27 = vpop.eup %3112  ;;  %v4342_v35 = vadd.f32 1.0, %v3111_v48  ;;  %v1991_v5 = vpack.c.bf16 %v1937_v36, %v4291_v13  ;;  %v4345_v8 = vpop.f32.mrf.mxu1  ;;  %v1307_v44 = vmul.f32 %v4282_v22, %v1306_v9  ;;  %3118 = vpow2.f32 %v2678_v40 }
 0x14f   : > { %v4348_v20 = vadd.f32 1.0, %v3113_v27  ;;  %v4351_v38 = vadd.f32 %v571_v17, %v3647_v1  ;;  %v1285_v43 = vand.u32 2147483648, %v4163_v50  ;;  %v1293_v31 = vadd.f32 %v4237_v39, %v1292_v14 }
 0x150   : > { %v3115_v49 = vpop.eup %3114  ;;  %vm1295_vm4 = vweird.f32 %v4237_v39  ;;  %3120 = vpow2.f32 %v2679_v3  ;;  %v1278_v13 = vadd.f32 %v4244_v7, %v1277_v59  ;;  %vm1280_vm5 = vweird.f32 %v4244_v7 }
 0x151   : > { %vm1294_vm6 = vweird.f32 %v4154_v24  ;;  %3122 = vrcp.f32 %v4348_v20  ;;  %v1298_v25 = vand.u32 2147483647, %v4154_v24  ;;  %v4370_v0 = vadd.f32 1.0, %v3115_v49  ;;  %2175 = vmatmul.bf16.gmra.mxu2 %v1991_v5  ;;  %vm4388_vm11 = vmor %vm1279_vm1, %vm1280_vm5 }
 0x152   : > { %3124 = vrcp.f32 %v4342_v35  ;;  %v2680_v52 = vmul.f32 -1.442695, %v4351_v38  ;;  %v1267_v26 = vsel %vm4364_vm7, %v4211_v28, %v1263_v58  ;;  %vm4378_vm8 = vmor %vm1294_vm6, %vm1295_vm4  ;;  %v1301_v46 = vor.u32 1.1754944e-38, %v1300_v34 }
 0x153   : > { %v4373_v32 = vpop.eup %3116  ;;  %v1308_v24 = vadd.f32 %v4282_v22, %v1307_v44  ;;  %vm1310_vm9 = vweird.f32 %v4282_v22  ;;  %v1297_v28 = vsel %vm4378_vm8, %v4237_v39, %v1293_v31  ;;  %v1315_v33 = vand.u32 2147483648, %v4183_v55 }
 0x154   : > { %3126 = vrcp.f32 %v4370_v0  ;;  %v1992_v47 = vpack.c.bf16 %v4322_v21, %v4298_v45  ;;  %v3119_v61 = vpop.eup %3118  ;;  %v1282_v50 = vsel %vm4388_vm11, %v4244_v7, %v1278_v13  ;;  %vm1309_vm10 = vweird.f32 %v4183_v55 }
 0x155   : > { %v1313_v11 = vand.u32 2147483647, %v4183_v55  ;;  %v1320_v62 = vmul.f32 %v4373_v32, %v4326_v18  ;;  %v1272_v30 = vsel %vm4333_vm3, %v1271_v29, %v1267_v26  ;;  %v1286_v16 = vor.u32 1.1754944e-38, %v1285_v43  ;;  %vm4410_vm13 = vmor %vm1309_vm10, %vm1310_vm9  ;;  %v4414_v7 = vpop.f32.mrf.mxu0 }
 0x156   : > { %v3121_v39 = vpop.eup %3120  ;;  %vm1299_vm12 = vcmp.eq.f32.partialorder %v1298_v25, 8.507059e+37  ;;  %3128 = vpow2.f32 %v2680_v52  ;;  %v4416_v57 = vpop.f32.mrf.mxu1  ;;  %vm1284_vm14 = vcmp.eq.f32.partialorder %v1283_v12, 8.507059e+37  ;;  %v1312_v21 = vsel %vm4410_vm13, %v4282_v22, %v1308_v24 }
 0x157   : > { %v4418_v55 = vpop.eup %3122  ;;  %v1302_v36 = vsel %vm1299_vm12, %v1301_v46, %v1297_v28  ;;  %v1287_v9 = vsel %vm1284_vm14, %v1286_v16, %v1282_v50  ;;  %v1316_v40 = vor.u32 1.1754944e-38, %v1315_v33  ;;  %2264 = vmatmul.bf16.gmra.mxu3 %v1992_v47  ;;  %v4427_v14 = vadd.f32 1.0, %v3119_v61 }
 0x158   : > { %v4423_v56 = vpop.eup %3124  ;;  %v1350_v29 = vmul.f32 %v4418_v55, %v4348_v20  ;;  %v1939_v3 = vmul.f32 %v1272_v30, %v4050_v19  ;;  %vm1314_vm15 = vcmp.eq.f32.partialorder %v1313_v11, 8.507059e+37  ;;  %v1321_v48 = vsub.f32 1.0, %v1320_v62 }
 0x159   : > { %v1941_v59 = vmul.f32 %v1302_v36, %v4096_v54  ;;  %v1317_v12 = vsel %vm1314_vm15, %v1316_v40, %v1312_v21  ;;  %v4433_v27 = vadd.f32 1.0, %v3121_v39  ;;  %v4436_v58 = vmul.f32 %v1287_v9, %v4058_v4 }
 0x15a   : > { %v4430_v37 = vpop.eup %3126  ;;  %v1351_v22 = vsub.f32 1.0, %v1350_v29  ;;  %v1330_v34 = vand.u32 2147483648, %v4326_v18  ;;  %v1335_v5 = vmul.f32 %v4423_v56, %v4342_v35  ;;  %v1328_v44 = vand.u32 2147483647, %v4326_v18 }
 0x15b   : > { %v1365_v19 = vmul.f32 %v4430_v37, %v4370_v0  ;;  %3130 = vrcp.f32 %v4427_v14  ;;  %v4448_v49 = vadd.f32 %v4345_v8, %v3649_v2  ;;  %v1942_v4 = vmul.f32 %v1317_v12, %v4106_v10 }
 0x15c   : > { %v3129_v17 = vpop.eup %3128  ;;  %v1352_v54 = vmul.f32 %v4418_v55, %v1351_v22  ;;  %v1322_v43 = vmul.f32 %v4373_v32, %v1321_v48  ;;  %v1345_v31 = vand.u32 2147483648, %v4342_v35  ;;  %v1358_v13 = vand.u32 2147483647, %v4348_v20 }
 0x15d   : > { %v1366_v51 = vsub.f32 1.0, %v1365_v19  ;;  %3132 = vrcp.f32 %v4433_v27  ;;  %v4455_v25 = vadd.f32 1.0, %v3129_v17  ;;  %v1993_v52 = vpack.c.bf16 %v1941_v59, %v1939_v3  ;;  %v576_v26 = vpop.f32.mrf.mxu0 }
 0x15e   : > { %v665_v53 = vpop.f32.mrf.mxu1  ;;  %vm1324_vm0 = vweird.f32 %v4326_v18  ;;  %v1331_v8 = vor.u32 1.1754944e-38, %v1330_v34  ;;  %v1336_v46 = vsub.f32 1.0, %v1335_v5  ;;  %v1360_v10 = vand.u32 2147483648, %v4348_v20 }
 0x15f   : > { %vm4459_vm1 = vcmp.eq.f32.partialorder %v1328_v44, 8.507059e+37  ;;  %v1353_v63 = vadd.f32 %v4418_v55, %v1352_v54  ;;  %vm1355_vm2 = vweird.f32 %v4418_v55  ;;  %3134 = vrcp.f32 %v4455_v25 }
 0x160   : > { %v2681_v28 = vmul.f32 -1.442695, %v4448_v49  ;;  %v1323_v33 = vadd.f32 %v4373_v32, %v1322_v43  ;;  %vm1325_vm3 = vweird.f32 %v4373_v32  ;;  %vm1339_vm4 = vweird.f32 %v4342_v35 }
 0x161   : > { %v1343_v47 = vand.u32 2147483647, %v4342_v35  ;;  %v1373_v61 = vand.u32 2147483647, %v4370_v0  ;;  %v4472_v50 = vpop.eup %3130  ;;  %v1346_v11 = vor.u32 1.1754944e-38, %v1345_v31  ;;  %vm1354_vm5 = vweird.f32 %v4348_v20  ;;  %2180 = vmatmul.bf16.gmra.mxu2 %v1993_v52  ;;  %vm4495_vm9 = vmor %vm1324_vm0, %vm1325_vm3 }
 0x162   : > { %vm4475_vm6 = vcmp.eq.f32.partialorder %v1358_v13, 8.507059e+37  ;;  %v1367_v39 = vmul.f32 %v4430_v37, %v1366_v51  ;;  %v1337_v30 = vmul.f32 %v4423_v56, %v1336_v46  ;;  %vm4483_vm7 = vmor %vm1354_vm5, %vm1355_vm2  ;;  %v1361_v45 = vor.u32 1.1754944e-38, %v1360_v10 }
 0x163   : > { %vm1369_vm8 = vweird.f32 %v4370_v0  ;;  %v1375_v20 = vand.u32 2147483648, %v4370_v0  ;;  %v4489_v36 = vpop.eup %3132  ;;  %vm1340_vm11 = vweird.f32 %v4423_v56  ;;  %v1357_v9 = vsel %vm4483_vm7, %v4418_v55, %v1353_v63 }
 0x164   : > { %3136 = vpow2.f32 %v2681_v28  ;;  %v1994_v40 = vpack.c.bf16 %v1942_v4, %v4436_v58  ;;  %v1327_v29 = vsel %vm4495_vm9, %v4373_v32, %v1323_v33  ;;  %vm4507_vm10 = vcmp.eq.f32.partialorder %v1343_v47, 8.507059e+37  ;;  %vm4560_vm15 = vmor %vm1339_vm4, %vm1340_vm11 }
 0x165   : > { %vm1370_vm12 = vweird.f32 %v4430_v37  ;;  %vm4512_vm13 = vcmp.eq.f32.partialorder %v1373_v61, 8.507059e+37  ;;  %v1380_v55 = vmul.f32 %v4472_v50, %v4427_v14  ;;  %v4518_v48 = vpop.eup %3134  ;;  %v1368_v59 = vadd.f32 %v4430_v37, %v1367_v39  ;;  %v579_v58 = vpop.f32.mrf.mxu0 }
 0x166   : > { %v4523_v32 = vadd.f32 %v4414_v7, %v3647_v1  ;;  %v4527_v12 = vadd.f32 %v4416_v57, %v3649_v2  ;;  %v4530_v22 = vadd.f32 %v576_v26, %v3647_v1  ;;  %v1338_v34 = vadd.f32 %v4423_v56, %v1337_v30  ;;  %v668_v4 = vpop.f32.mrf.mxu1  ;;  %vm4550_vm14 = vmor %vm1369_vm8, %vm1370_vm12 }
 0x167   : > { %v1362_v5 = vsel %vm4475_vm6, %v1361_v45, %v1357_v9  ;;  %v1395_v19 = vmul.f32 %v4489_v36, %v4433_v27  ;;  %v4538_v17 = vadd.f32 %v665_v53, %v3649_v2  ;;  %v1376_v7 = vor.u32 1.1754944e-38, %v1375_v20  ;;  %2269 = vmatmul.bf16.gmra.mxu3 %v1994_v40 }
 0x168   : > { %v1410_v57 = vmul.f32 %v4518_v48, %v4455_v25  ;;  %v2682_v44 = vmul.f32 -1.442695, %v4523_v32  ;;  %v2683_v54 = vmul.f32 -1.442695, %v4527_v12  ;;  %v1332_v43 = vsel %vm4459_vm1, %v1331_v8, %v1327_v29 }
 0x169   : > { %v1381_v13 = vsub.f32 1.0, %v1380_v55  ;;  %v1388_v51 = vand.u32 2147483647, %v4427_v14  ;;  %v2684_v52 = vmul.f32 -1.442695, %v4530_v22  ;;  %v1945_v0 = vmul.f32 %v1362_v5, %v4260_v42 }
 0x16a   : > { %v3137_v26 = vpop.eup %3136  ;;  %v1372_v8 = vsel %vm4550_vm14, %v4430_v37, %v1368_v59  ;;  %3138 = vpow2.f32 %v2682_v44  ;;  %v2685_v46 = vmul.f32 -1.442695, %v4538_v17  ;;  %v1342_v10 = vsel %vm4560_vm15, %v4423_v56, %v1338_v34 }
 0x16b   : > { %vm1384_vm0 = vweird.f32 %v4427_v14  ;;  %v1396_v35 = vsub.f32 1.0, %v1395_v19  ;;  %v4573_v24 = vadd.f32 1.0, %v3137_v26  ;;  %3140 = vpow2.f32 %v2683_v54 }
 0x16c   : > { %v1943_v63 = vmul.f32 %v1332_v43, %v4228_v15  ;;  %v1411_v42 = vsub.f32 1.0, %v1410_v57  ;;  %3142 = vpow2.f32 %v2684_v52  ;;  %v4577_v28 = vadd.f32 %v579_v58, %v3647_v1 }
 0x16d   : > { %v1377_v37 = vsel %vm4512_vm13, %v1376_v7, %v1372_v8  ;;  %v1382_v33 = vmul.f32 %v4472_v50, %v1381_v13  ;;  %v1390_v56 = vand.u32 2147483648, %v4427_v14  ;;  %3144 = vrcp.f32 %v4573_v24  ;;  %v581_v61 = vpop.f32.mrf.mxu0 }
 0x16e   : > { %v1347_v47 = vsel %vm4507_vm10, %v1346_v11, %v1342_v10  ;;  %vm1399_vm1 = vweird.f32 %v4433_v27  ;;  %3146 = vpow2.f32 %v2685_v46  ;;  %v1995_v15 = vpack.c.bf16 %v1945_v0, %v1943_v63  ;;  %v670_v34 = vpop.f32.mrf.mxu1 }
 0x16f   : > { %v1397_v62 = vmul.f32 %v4489_v36, %v1396_v35  ;;  %v1403_v39 = vand.u32 2147483647, %v4433_v27  ;;  %v1405_v30 = vand.u32 2147483648, %v4433_v27  ;;  %v4591_v16 = vadd.f32 %v668_v4, %v3649_v2 }
 0x170   : > { %v3139_v45 = vpop.eup %3138  ;;  %v1946_v20 = vmul.f32 %v1377_v37, %v4302_v41  ;;  %vm1385_vm2 = vweird.f32 %v4472_v50  ;;  %vm4595_vm3 = vcmp.eq.f32.partialorder %v1388_v51, 8.507059e+37  ;;  %v1412_v21 = vmul.f32 %v4518_v48, %v1411_v42 }
 0x171   : > { %v2686_v9 = vmul.f32 -1.442695, %v4577_v28  ;;  %v3141_v40 = vpop.eup %3140  ;;  %v1944_v29 = vmul.f32 %v1347_v47, %v4242_v60  ;;  %v1383_v3 = vadd.f32 %v4472_v50, %v1382_v33  ;;  %vm1400_vm4 = vweird.f32 %v4489_v36  ;;  %2185 = vmatmul.bf16.gmra.mxu2 %v1995_v15  ;;  %vm4623_vm7 = vmor %vm1384_vm0, %vm1385_vm2 }
 0x172   : > { %v4604_v18 = vadd.f32 1.0, %v3139_v45  ;;  %v3143_v41 = vpop.eup %3142  ;;  %vm1414_vm5 = vweird.f32 %v4455_v25  ;;  %v1418_v55 = vand.u32 2147483647, %v4455_v25  ;;  %v4608_v59 = vadd.f32 1.0, %v3141_v40  ;;  %vm4642_vm8 = vmor %vm1399_vm1, %vm1400_vm4 }
 0x173   : > { %v4611_v58 = vadd.f32 %v581_v61, %v3647_v1  ;;  %v4613_v5 = vpop.eup %3144  ;;  %v1398_v60 = vadd.f32 %v4489_v36, %v1397_v62  ;;  %vm1415_vm6 = vweird.f32 %v4518_v48  ;;  %v2687_v19 = vmul.f32 -1.442695, %v4591_v16 }
 0x174   : > { %3148 = vrcp.f32 %v4604_v18  ;;  %v3147_v7 = vpop.eup %3146  ;;  %v1413_v44 = vadd.f32 %v4518_v48, %v1412_v21  ;;  %v1425_v54 = vmul.f32 %v4613_v5, %v4573_v24  ;;  %v1996_v4 = vpack.c.bf16 %v1946_v20, %v1944_v29  ;;  %vm4660_vm11 = vmor %vm1414_vm5, %vm1415_vm6 }
 0x175   : > { %3150 = vpow2.f32 %v2686_v9  ;;  %v1387_v43 = vsel %vm4623_vm7, %v4472_v50, %v1383_v3  ;;  %v1420_v31 = vand.u32 2147483648, %v4455_v25  ;;  %v4636_v14 = vadd.f32 %v670_v34, %v3649_v2  ;;  %v4651_v53 = vpop.f32.mrf.mxu0 }
 0x176   : > { %3152 = vrcp.f32 %v4608_v59  ;;  %v1426_v51 = vsub.f32 1.0, %v1425_v54  ;;  %v4646_v52 = vadd.f32 1.0, %v3143_v41  ;;  %v4648_v26 = vadd.f32 1.0, %v3147_v7  ;;  %v4690_v40 = vpop.f32.mrf.mxu1 }
 0x177   : > { %v2688_v50 = vmul.f32 -1.442695, %v4611_v58  ;;  %v1391_v0 = vor.u32 1.1754944e-38, %v1390_v56  ;;  %v1402_v8 = vsel %vm4642_vm8, %v4489_v36, %v1398_v60  ;;  %vm1404_vm9 = vcmp.eq.f32.partialorder %v1403_v39, 8.507059e+37  ;;  %2274 = vmatmul.bf16.gmra.mxu3 %v1996_v4 }
 0x178   : > { %3154 = vpow2.f32 %v2687_v19  ;;  %v1406_v46 = vor.u32 1.1754944e-38, %v1405_v30  ;;  %v1417_v10 = vsel %vm4660_vm11, %v4518_v48, %v1413_v44  ;;  %vm1419_vm10 = vcmp.eq.f32.partialorder %v1418_v55, 8.507059e+37 }
 0x179   : > { %3156 = vrcp.f32 %v4646_v52  ;;  %v1392_v35 = vsel %vm4595_vm3, %v1391_v0, %v1387_v43  ;;  %v1421_v25 = vor.u32 1.1754944e-38, %v1420_v31  ;;  %v2689_v63 = vmul.f32 -1.442695, %v4636_v14 }
 0x17a   : > { %v4668_v36 = vpop.eup %3148  ;;  %3158 = vrcp.f32 %v4648_v26  ;;  %v1407_v37 = vsel %vm1404_vm9, %v1406_v46, %v1402_v8  ;;  %v1427_v33 = vmul.f32 %v4613_v5, %v1426_v51  ;;  %v1433_v15 = vand.u32 2147483647, %v4573_v24 }
 0x17b   : > { %v3151_v42 = vpop.eup %3150  ;;  %v1440_v48 = vmul.f32 %v4668_v36, %v4604_v18  ;;  %3160 = vpow2.f32 %v2688_v50  ;;  %v1422_v47 = vsel %vm1419_vm10, %v1421_v25, %v1417_v10  ;;  %v1435_v61 = vand.u32 2147483648, %v4573_v24 }
 0x17c   : > { %v4677_v56 = vpop.eup %3152  ;;  %v1947_v30 = vmul.f32 %v1392_v35, %v4315_v6  ;;  %v4683_v45 = vmul.f32 %v1407_v37, %v4318_v23  ;;  %3162 = vpow2.f32 %v2689_v63  ;;  %v1949_v11 = vmul.f32 %v1422_v47, %v4351_v38 }
 0x17d   : > { %v1441_v62 = vsub.f32 1.0, %v1440_v48  ;;  %v1428_v21 = vadd.f32 %v4613_v5, %v1427_v33  ;;  %vm1430_vm12 = vweird.f32 %v4613_v5  ;;  %v1455_v9 = vmul.f32 %v4677_v56, %v4608_v59  ;;  %v4705_v60 = vpop.f32.mrf.mxu0 }
 0x17e   : > { %v3155_v39 = vpop.eup %3154  ;;  %vm1429_vm13 = vweird.f32 %v4573_v24  ;;  %vm4695_vm14 = vcmp.eq.f32.partialorder %v1433_v15, 8.507059e+37  ;;  %v4700_v38 = vadd.f32 1.0, %v3151_v42  ;;  %v1436_v41 = vor.u32 1.1754944e-38, %v1435_v61  ;;  %v675_v61 = vpop.f32.mrf.mxu1 }
 0x17f   : > { %v3157_v20 = vpop.eup %3156  ;;  %v1442_v55 = vmul.f32 %v4668_v36, %v1441_v62  ;;  %vm1444_vm15 = vweird.f32 %v4604_v18  ;;  %v1448_v34 = vand.u32 2147483647, %v4604_v18  ;;  %vm4707_vm0 = vmor %vm1429_vm13, %vm1430_vm12  ;;  %v1450_v19 = vand.u32 2147483648, %v4604_v18 }
 0x180   : > { %v4692_v29 = vpop.eup %3158  ;;  %v1470_v23 = vmul.f32 %v3157_v20, %v4646_v52  ;;  %v1480_v57 = vand.u32 2147483648, %v4646_v52  ;;  %v1432_v54 = vsel %vm4707_vm0, %v4613_v5, %v1428_v21  ;;  %v1456_v4 = vsub.f32 1.0, %v1455_v9 }
 0x181   : > { %v3161_v3 = vpop.eup %3160  ;;  %v1485_v44 = vmul.f32 %v4692_v29, %v4648_v26  ;;  %v4718_v43 = vadd.f32 1.0, %v3155_v39  ;;  %v1997_v31 = vpack.c.bf16 %v1949_v11, %v1947_v30  ;;  %vm1475_vm1 = vweird.f32 %v3157_v20 }
 0x182   : > { %v1471_v7 = vsub.f32 1.0, %v1470_v23  ;;  %v3163_v13 = vpop.eup %3162  ;;  %3164 = vrcp.f32 %v4700_v38  ;;  %v4721_v50 = vadd.f32 1.0, %v3161_v3  ;;  %v1443_v0 = vadd.f32 %v4668_v36, %v1442_v55 }
 0x183   : > { %vm1445_vm2 = vweird.f32 %v4668_v36  ;;  %vm4725_vm3 = vcmp.eq.f32.partialorder %v1448_v34, 8.507059e+37  ;;  %vm1459_vm4 = vweird.f32 %v4608_v59  ;;  %v1478_v5 = vand.u32 2147483647, %v4646_v52  ;;  %2190 = vmatmul.bf16.gmra.mxu2 %v1997_v31  ;;  %v4758_v62 = vpop.f32.mrf.mxu2 }
 0x184   : > { %v1472_v51 = vmul.f32 %v3157_v20, %v1471_v7  ;;  %v1463_v27 = vand.u32 2147483647, %v4608_v59  ;;  %vm1474_vm5 = vweird.f32 %v4646_v52  ;;  %v1486_v10 = vsub.f32 1.0, %v1485_v44  ;;  %vm4746_vm7 = vmor %vm1444_vm15, %vm1445_vm2 }
 0x185   : > { %v1437_v35 = vsel %vm4695_vm14, %v1436_v41, %v1432_v54  ;;  %v1457_v25 = vmul.f32 %v4677_v56, %v1456_v4  ;;  %vm4737_vm6 = vmor %vm1474_vm5, %vm1475_vm1  ;;  %3166 = vrcp.f32 %v4718_v43  ;;  %v4742_v42 = vadd.f32 1.0, %v3163_v13  ;;  %v589_v6 = vpop.f32.mrf.mxu0 }
 0x186   : > { %v1473_v46 = vadd.f32 %v3157_v20, %v1472_v51  ;;  %v1465_v52 = vand.u32 2147483648, %v4608_v59  ;;  %v1481_v48 = vor.u32 1.1754944e-38, %v1480_v57  ;;  %3168 = vrcp.f32 %v4721_v50  ;;  %v4786_v7 = vpop.f32.mrf.mxu3  ;;  %v678_v37 = vpop.f32.mrf.mxu1 }
 0x187   : > { %v1447_v47 = vsel %vm4746_vm7, %v4668_v36, %v1443_v0  ;;  %v1451_v15 = vor.u32 1.1754944e-38, %v1450_v19  ;;  %vm1479_vm8 = vcmp.eq.f32.partialorder %v1478_v5, 8.507059e+37  ;;  %v1493_v18 = vand.u32 2147483647, %v4648_v26 }
 0x188   : > { %v1477_v33 = vsel %vm4737_vm6, %v3157_v20, %v1473_v46  ;;  %v4760_v39 = vpop.eup %3164  ;;  %v1950_v30 = vmul.f32 %v1437_v35, %v4448_v49  ;;  %v1487_v20 = vmul.f32 %v4692_v29, %v1486_v10  ;;  %v1495_v21 = vand.u32 2147483648, %v4648_v26 }
 0x189   : > { %v1482_v11 = vsel %vm1479_vm8, %v1481_v48, %v1477_v33  ;;  %v1458_v9 = vadd.f32 %v4677_v56, %v1457_v25  ;;  %vm1460_vm9 = vweird.f32 %v4677_v56  ;;  %v1510_v36 = vand.u32 2147483648, %v4700_v38 }
 0x18a   : > { %3170 = vrcp.f32 %v4742_v42  ;;  %v1452_v23 = vsel %vm4725_vm3, %v1451_v15, %v1447_v47  ;;  %vm4771_vm11 = vcmp.eq.f32.partialorder %v1463_v27, 8.507059e+37  ;;  %v1466_v49 = vor.u32 1.1754944e-38, %v1465_v52  ;;  %vm4794_vm13 = vmor %vm1459_vm4, %vm1460_vm9 }
 0x18b   : > { %vm1489_vm10 = vweird.f32 %v4648_v26  ;;  %v4776_v41 = vpop.eup %3166  ;;  %v1953_v55 = vmul.f32 %v1482_v11, %v4530_v22  ;;  %vm4779_vm12 = vcmp.eq.f32.partialorder %v1493_v18, 8.507059e+37  ;;  %v1500_v24 = vmul.f32 %v4760_v39, %v4700_v38  ;;  %v2158_v52 = vpop.f32.mrf.mxu2 }
 0x18c   : > { %v1508_v19 = vand.u32 2147483647, %v4700_v38  ;;  %v4788_v57 = vpop.eup %3168  ;;  %v1488_v22 = vadd.f32 %v4692_v29, %v1487_v20  ;;  %vm1490_vm14 = vweird.f32 %v4692_v29  ;;  %v1496_v54 = vor.u32 1.1754944e-38, %v1495_v21 }
 0x18d   : > { %v1998_v4 = vpack.c.bf16 %v1950_v30, %v4683_v45  ;;  %v1951_v31 = vmul.f32 %v1452_v23, %v4523_v32  ;;  %v1462_v13 = vsel %vm4794_vm13, %v4677_v56, %v1458_v9  ;;  %v4805_v51 = vor.u32 1.1754944e-38, %v1510_v36  ;;  %vm4828_vm15 = vmor %vm1489_vm10, %vm1490_vm14  ;;  %v591_v30 = vpop.f32.mrf.mxu0 }
 0x18e   : > { %v4809_v59 = vadd.f32 %v4651_v53, %v3647_v1  ;;  %v1515_v0 = vmul.f32 %v4776_v41, %v4718_v43  ;;  %v4815_v8 = vadd.f32 %v4690_v40, %v3649_v2  ;;  %v4819_v32 = vadd.f32 %v4705_v60, %v3647_v1 }
 0x18f   : > { %2279 = vmatmul.bf16.gmra.mxu3 %v1998_v4  ;;  %v4822_v56 = vadd.f32 %v675_v61, %v3649_v2  ;;  %v1501_v5 = vsub.f32 1.0, %v1500_v24  ;;  %v1530_v40 = vmul.f32 %v4788_v57, %v4721_v50  ;;  %v1999_v46 = vpack.c.bf16 %v1953_v55, %v1951_v31  ;;  %v4857_v61 = vld [vmem:[%s5806_s4] ss:$0 sm:$0xff] }
 0x190   : > { %v4824_v45 = vpop.eup %3170  ;;  %v2690_v27 = vmul.f32 -1.442695, %v4809_v59  ;;  %v1467_v60 = vsel %vm4771_vm11, %v1466_v49, %v1462_v13  ;;  %v1492_v10 = vsel %vm4828_vm15, %v4692_v29, %v1488_v22  ;;  %v2691_v26 = vmul.f32 -1.442695, %v4815_v8 }
 0x191   : > { %v2692_v35 = vmul.f32 -1.442695, %v4819_v32  ;;  %vm1505_vm0 = vweird.f32 %v4760_v39  ;;  %v1545_v25 = vmul.f32 %v4824_v45, %v4742_v42  ;;  %v2693_v63 = vmul.f32 -1.442695, %v4822_v56 }
 0x192   : > { %3172 = vpow2.f32 %v2690_v27  ;;  %vm1504_vm1 = vweird.f32 %v4700_v38  ;;  %v1516_v33 = vsub.f32 1.0, %v1515_v0  ;;  %v1525_v48 = vand.u32 2147483648, %v4718_v43 }
 0x193   : > { %3174 = vpow2.f32 %v2691_v26  ;;  %v4849_v29 = vadd.f32 %v589_v6, %v3647_v1  ;;  %v1497_v47 = vsel %vm4779_vm12, %v1496_v54, %v1492_v10  ;;  %v1502_v15 = vmul.f32 %v4760_v39, %v1501_v5  ;;  %2195 = vmatmul.bf16.gmra.mxu2 %v1999_v46  ;;  %v2247_v6 = vpop.f32.mrf.mxu3  ;;  %vm4902_vm7 = vmor %vm1504_vm1, %vm1505_vm0 }
 0x194   : > { %v1531_v18 = vsub.f32 1.0, %v1530_v40  ;;  %3176 = vpow2.f32 %v2692_v35  ;;  %v1952_v11 = vmul.f32 %v1467_v60, %v4527_v12  ;;  %vm1519_vm2 = vweird.f32 %v4718_v43 }
 0x195   : > { %v1523_v20 = vand.u32 2147483647, %v4718_v43  ;;  %3178 = vpow2.f32 %v2693_v63  ;;  %vm1534_vm3 = vweird.f32 %v4721_v50  ;;  %v1546_v21 = vsub.f32 1.0, %v1545_v25  ;;  %v680_v25 = vpop.f32.mrf.mxu1  ;;  %v2161_v63 = vpop.f32.mrf.mxu2 }
 0x196   : > { %v2694_v9 = vmul.f32 -1.442695, %v4849_v29  ;;  %v4865_v36 = vadd.f32 %v678_v37, %v3649_v2  ;;  %v1954_v23 = vmul.f32 %v1497_v47, %v4538_v17  ;;  %v1517_v3 = vmul.f32 %v4776_v41, %v1516_v33 }
 0x197   : > { %v4869_v49 = vor.u32 1.1754944e-38, %v1525_v48  ;;  %v2159_v12 = vadd.f32 %v4857_v61, %v2158_v52  ;;  %v1503_v34 = vadd.f32 %v4760_v39, %v1502_v15  ;;  %vm4873_vm4 = vcmp.eq.f32.partialorder %v1508_v19, 8.507059e+37 }
 0x198   : > { %v3173_v55 = vpop.eup %3172  ;;  %v1532_v44 = vmul.f32 %v4788_v57, %v1531_v18  ;;  %v1538_v22 = vand.u32 2147483647, %v4721_v50  ;;  %v2157_v17 = vadd.f32 %v4857_v61, %v4758_v62  ;;  %vm4881_vm5 = vcmp.eq.f32.partialorder %v1523_v20, 8.507059e+37 }
 0x199   : > { %v3175_v54 = vpop.eup %3174  ;;  %v1540_v31 = vand.u32 2147483648, %v4721_v50  ;;  %v4886_v13 = vadd.f32 1.0, %v3173_v55  ;;  %3180 = vpow2.f32 %v2694_v9  ;;  %v4889_v19 = vadd.f32 %v591_v30, %v3647_v1 }
 0x19a   : > { %v3177_v0 = vpop.eup %3176  ;;  %v1547_v53 = vmul.f32 %v4824_v45, %v1546_v21  ;;  %v4892_v5 = vadd.f32 1.0, %v3175_v54  ;;  %v2695_v62 = vmul.f32 -1.442695, %v4865_v36  ;;  %v2248_v40 = vadd.f32 %v2247_v6, %v2159_v12 }
 0x19b   : > { %v3179_v27 = vpop.eup %3178  ;;  %v1518_v46 = vadd.f32 %v4776_v41, %v1517_v3  ;;  %vm1520_vm6 = vweird.f32 %v4776_v41  ;;  %3182 = vrcp.f32 %v4886_v13  ;;  %v2000_v60 = vpack.c.bf16 %v1954_v23, %v1952_v11  ;;  %v4956_v20 = vpop.f32.mrf.mxu3 }
 0x19c   : > { %v1533_v26 = vadd.f32 %v4788_v57, %v1532_v44  ;;  %vm1535_vm8 = vweird.f32 %v4788_v57  ;;  %3184 = vrcp.f32 %v4892_v5  ;;  %v2246_v35 = vadd.f32 %v4786_v7, %v2157_v17  ;;  %vm4920_vm9 = vmor %vm1519_vm2, %vm1520_vm6 }
 0x19d   : > { %v1507_v37 = vsel %vm4902_vm7, %v4760_v39, %v1503_v34  ;;  %v4913_v52 = vadd.f32 1.0, %v3177_v0  ;;  %v4915_v38 = vadd.f32 1.0, %v3179_v27  ;;  %v2696_v33 = vmul.f32 -1.442695, %v4889_v19  ;;  %v4926_v39 = vpop.f32.mrf.mxu0  ;;  %vm4935_vm10 = vmor %vm1534_vm3, %vm1535_vm8  ;;  %v5006_v27 = vpop.f32.mrf.mxu1 }
 0x19e   : > { %v1548_v7 = vadd.f32 %v4824_v45, %v1547_v53  ;;  %vm1550_vm11 = vweird.f32 %v4824_v45  ;;  %3186 = vpow2.f32 %v2695_v62  ;;  %v2836_v47 = vpack.c.bf16 %v2248_v40, %v2246_v35 }
 0x19f   : > { %v3181_v15 = vpop.eup %3180  ;;  %v1522_v18 = vsel %vm4920_vm9, %v4776_v41, %v1518_v46  ;;  %vm1549_vm12 = vweird.f32 %v4742_v42  ;;  %v1555_v30 = vand.u32 2147483648, %v4742_v42  ;;  %3188 = vrcp.f32 %v4913_v52  ;;  %2284 = vmatmul.bf16.gmra.mxu3 %v2000_v60 }
 0x1a0   : > { %v1537_v11 = vsel %vm4935_vm10, %v4788_v57, %v1533_v26  ;;  %vm4945_vm13 = vcmp.eq.f32.partialorder %v1538_v22, 8.507059e+37  ;;  %v1553_v50 = vand.u32 2147483647, %v4742_v42  ;;  %3190 = vrcp.f32 %v4915_v38  ;;  %2837 = vst [vmem:[%s4953_s28] sm:$0xff] %v2836_v47   ;;  %vm4965_vm14 = vmor %vm1549_vm12, %vm1550_vm11 }
 0x1a1   : > { %v4958_v21 = vpop.eup %3182  ;;  %v1512_v57 = vsel %vm4873_vm4, %v4805_v51, %v1507_v37  ;;  %v1541_v9 = vor.u32 1.1754944e-38, %v1540_v31  ;;  %3192 = vpow2.f32 %v2696_v33  ;;  %v4970_v6 = vadd.f32 %v680_v25, %v3649_v2 }
 0x1a2   : > { %v4972_v23 = vpop.eup %3184  ;;  %v1527_v3 = vsel %vm4881_vm5, %v4869_v49, %v1522_v18  ;;  %v1552_v51 = vsel %vm4965_vm14, %v4824_v45, %v1548_v7  ;;  %v1560_v12 = vmul.f32 %v4958_v21, %v4886_v13  ;;  %v4982_v55 = vadd.f32 1.0, %v3181_v15 }
 0x1a3   : > { %v1542_v34 = vsel %vm4945_vm13, %v1541_v9, %v1537_v11  ;;  %v1556_v24 = vor.u32 1.1754944e-38, %v1555_v30  ;;  %v1575_v44 = vmul.f32 %v4972_v23, %v4892_v5  ;;  %v4989_v17 = vmul.f32 %v1512_v57, %v4577_v28  ;;  %v5035_v18 = vpop.f32.mrf.mxu3 }
 0x1a4   : > { %v3187_v22 = vpop.eup %3186  ;;  %vm1554_vm15 = vcmp.eq.f32.partialorder %v1553_v50, 8.507059e+37  ;;  %v1561_v49 = vsub.f32 1.0, %v1560_v12  ;;  %v4994_v45 = vmul.f32 %v1527_v3, %v4591_v16  ;;  %v2697_v0 = vmul.f32 -1.442695, %v4970_v6  ;;  %v5008_v16 = vpop.f32.mrf.mxu2 }
 0x1a5   : > { %v4991_v54 = vpop.eup %3188  ;;  %v1557_v4 = vsel %vm1554_vm15, %v1556_v24, %v1552_v51  ;;  %v1576_v31 = vsub.f32 1.0, %v1575_v44  ;;  %v5000_v62 = vmul.f32 %v1542_v34, %v4611_v58  ;;  %v1568_v40 = vand.u32 2147483647, %v4886_v13  ;;  %v5022_v48 = vpop.f32.mrf.mxu0 }
 0x1a6   : > { %v4997_v53 = vpop.eup %3190  ;;  %v1590_v28 = vmul.f32 %v4991_v54, %v4913_v52  ;;  %3194 = vrcp.f32 %v4982_v55  ;;  %v1570_v60 = vand.u32 2147483648, %v4886_v13  ;;  %v1583_v10 = vand.u32 2147483647, %v4892_v5 }
 0x1a7   : > { %v3193_v46 = vpop.eup %3192  ;;  %v1605_v58 = vmul.f32 %v4997_v53, %v4915_v38  ;;  %v5015_v26 = vadd.f32 %v4857_v61, %v2161_v63  ;;  %v5018_v35 = vmul.f32 %v1557_v4, %v4636_v14  ;;  %v1562_v25 = vmul.f32 %v4958_v21, %v1561_v49 }
 0x1a8   : > { %v1577_v37 = vmul.f32 %v4972_v23, %v1576_v31  ;;  %v1591_v33 = vsub.f32 1.0, %v1590_v28  ;;  %v1585_v7 = vand.u32 2147483648, %v4892_v5  ;;  %v5025_v15 = vadd.f32 1.0, %v3187_v22 }
 0x1a9   : > { %v1606_v47 = vsub.f32 1.0, %v1605_v58  ;;  %3196 = vpow2.f32 %v2697_v0  ;;  %vm1564_vm0 = vweird.f32 %v4886_v13  ;;  %vm5028_vm1 = vcmp.eq.f32.partialorder %v1568_v40, 8.507059e+37  ;;  %v685_v40 = vpop.f32.mrf.mxu1 }
 0x1aa   : > { %vm1579_vm2 = vweird.f32 %v4892_v5  ;;  %v5033_v14 = vadd.f32 1.0, %v3193_v46  ;;  %vm1565_vm3 = vweird.f32 %v4958_v21  ;;  %v1571_v43 = vor.u32 1.1754944e-38, %v1570_v60 }
 0x1ab   : > { %vm5038_vm4 = vcmp.eq.f32.partialorder %v1583_v10, 8.507059e+37  ;;  %v1598_v11 = vand.u32 2147483647, %v4913_v52  ;;  %v1563_v50 = vadd.f32 %v4958_v21, %v1562_v25  ;;  %v1578_v57 = vadd.f32 %v4972_v23, %v1577_v37  ;;  %vm5054_vm6 = vmor %vm1564_vm0, %vm1565_vm3 }
 0x1ac   : > { %v5043_v41 = vpop.eup %3194  ;;  %vm1580_vm5 = vweird.f32 %v4972_v23  ;;  %v1592_v9 = vmul.f32 %v4991_v54, %v1591_v33  ;;  %v1586_v42 = vor.u32 1.1754944e-38, %v1585_v7  ;;  %v1600_v3 = vand.u32 2147483648, %v4913_v52  ;;  %v2166_v28 = vpop.f32.mrf.mxu2 }
 0x1ad   : > { %v1607_v51 = vmul.f32 %v4997_v53, %v1606_v47  ;;  %3198 = vrcp.f32 %v5025_v15  ;;  %vm1594_vm7 = vweird.f32 %v4913_v52  ;;  %v1613_v34 = vand.u32 2147483647, %v4915_v38  ;;  %vm5064_vm8 = vmor %vm1579_vm2, %vm1580_vm5  ;;  %v599_v37 = vpop.f32.mrf.mxu0 }
 0x1ae   : > { %v1615_v24 = vand.u32 2147483648, %v4915_v38  ;;  %3200 = vrcp.f32 %v5033_v14  ;;  %vm5068_vm9 = vcmp.eq.f32.partialorder %v1598_v11, 8.507059e+37  ;;  %vm1609_vm11 = vweird.f32 %v4915_v38 }
 0x1af   : > { %v3197_v44 = vpop.eup %3196  ;;  %v1620_v49 = vmul.f32 %v5043_v41, %v4982_v55  ;;  %v1630_v4 = vand.u32 2147483648, %v4982_v55  ;;  %v1567_v31 = vsel %vm5054_vm6, %v4958_v21, %v1563_v50  ;;  %v1582_v5 = vsel %vm5064_vm8, %v4972_v23, %v1578_v57 }
 0x1b0   : > { %v1593_v0 = vadd.f32 %v4991_v54, %v1592_v9  ;;  %vm1595_vm10 = vweird.f32 %v4991_v54  ;;  %v1601_v46 = vor.u32 1.1754944e-38, %v1600_v3  ;;  %v1608_v60 = vadd.f32 %v4997_v53, %v1607_v51  ;;  %v2255_v30 = vpop.f32.mrf.mxu3 }
 0x1b1   : > { %vm1610_vm12 = vweird.f32 %v4997_v53  ;;  %v5086_v10 = vadd.f32 1.0, %v3197_v44  ;;  %vm5088_vm13 = vcmp.eq.f32.partialorder %v1613_v34, 8.507059e+37  ;;  %v1616_v21 = vor.u32 1.1754944e-38, %v1615_v24  ;;  %vm5106_vm14 = vmor %vm1594_vm7, %vm1595_vm10 }
 0x1b2   : > { %v2001_v23 = vpack.c.bf16 %v5000_v62, %v4989_v17  ;;  %v2002_v25 = vpack.c.bf16 %v5018_v35, %v4994_v45  ;;  %v1572_v7 = vsel %vm5028_vm1, %v1571_v43, %v1567_v31  ;;  %v1587_v47 = vsel %vm5038_vm4, %v1586_v42, %v1582_v5  ;;  %vm5120_vm15 = vmor %vm1609_vm11, %vm1610_vm12  ;;  %v688_v31 = vpop.f32.mrf.mxu1 }
 0x1b3   : > { %v5096_v33 = vpop.eup %3198  ;;  %v1621_v17 = vsub.f32 1.0, %v1620_v49  ;;  %3202 = vrcp.f32 %v5086_v10  ;;  %v1597_v62 = vsel %vm5106_vm14, %v4991_v54, %v1593_v0  ;;  %v1628_v52 = vand.u32 2147483647, %v4982_v55 }
 0x1b4   : > { %v5111_v45 = vpop.eup %3200  ;;  %v5125_v63 = vor.u32 1.1754944e-38, %v1630_v4  ;;  %v1643_v43 = vand.u32 2147483647, %v5025_v15  ;;  %2200 = vmatmul.bf16.gmra.mxu2 %v2001_v23  ;;  %2289 = vmatmul.bf16.gmra.mxu3 %v2002_v25  ;;  %v1612_v54 = vsel %vm5120_vm15, %v4997_v53, %v1608_v60  ;;  %v1645_v50 = vand.u32 2147483648, %v5025_v15  ;;  %v2168_v5 = vpop.f32.mrf.mxu2 }
 0x1b5   : > { %v1650_v38 = vmul.f32 %v5111_v45, %v5033_v14  ;;  %v5136_v57 = vadd.f32 %v4926_v39, %v3647_v1  ;;  %v5139_v9 = vmul.f32 %v1572_v7, %v4809_v59  ;;  %v5142_v42 = vmul.f32 %v1587_v47, %v4815_v8  ;;  %v601_v58 = vpop.f32.mrf.mxu0 }
 0x1b6   : > { %v1635_v3 = vmul.f32 %v5096_v33, %v5025_v15  ;;  %v5148_v53 = vadd.f32 %v5006_v27, %v3649_v2  ;;  %v1602_v51 = vsel %vm5068_vm9, %v1601_v46, %v1597_v62  ;;  %v1622_v12 = vmul.f32 %v5043_v41, %v1621_v17 }
 0x1b7   : > { %v2698_v39 = vmul.f32 -1.442695, %v5136_v57  ;;  %v2164_v59 = vadd.f32 %v4857_v61, %v5008_v16  ;;  %v1617_v8 = vsel %vm5088_vm13, %v1616_v21, %v1612_v54  ;;  %vm1625_vm0 = vweird.f32 %v5043_v41 }
 0x1b8   : > { %v2699_v34 = vmul.f32 -1.442695, %v5148_v53  ;;  %v5162_v27 = vadd.f32 %v5022_v48, %v3647_v1  ;;  %v5165_v24 = vadd.f32 %v685_v40, %v3649_v2  ;;  %v1651_v22 = vsub.f32 1.0, %v1650_v38  ;;  %v2257_v7 = vpop.f32.mrf.mxu3 }
 0x1b9   : > { %v5167_v44 = vpop.eup %3202  ;;  %v2251_v16 = vadd.f32 %v4956_v20, %v5015_v26  ;;  %3204 = vpow2.f32 %v2698_v39  ;;  %v2253_v13 = vadd.f32 %v5035_v18, %v2164_v59  ;;  %vm1624_vm1 = vweird.f32 %v4982_v55 }
 0x1ba   : > { %v1636_v49 = vsub.f32 1.0, %v1635_v3  ;;  %v1665_v4 = vmul.f32 %v5167_v44, %v5086_v10  ;;  %3206 = vpow2.f32 %v2699_v34  ;;  %v2700_v48 = vmul.f32 -1.442695, %v5162_v27  ;;  %vm5218_vm7 = vmor %vm1624_vm1, %vm1625_vm0 }
 0x1bb   : > { %v1961_v0 = vmul.f32 %v1602_v51, %v4819_v32  ;;  %vm1640_vm2 = vweird.f32 %v5096_v33  ;;  %vm1654_vm3 = vweird.f32 %v5033_v14  ;;  %v2841_v20 = vpack.c.bf16 %v2253_v13, %v2251_v16 }
 0x1bc   : > { %v2701_v26 = vmul.f32 -1.442695, %v5165_v24  ;;  %v2167_v18 = vadd.f32 %v4857_v61, %v2166_v28  ;;  %v1962_v40 = vmul.f32 %v1617_v8, %v4822_v56  ;;  %v1666_v46 = vsub.f32 1.0, %v1665_v4 }
 0x1bd   : > { %3208 = vpow2.f32 %v2700_v48  ;;  %v5183_v60 = vadd.f32 %v599_v37, %v3647_v1  ;;  %vm1639_vm4 = vweird.f32 %v5025_v15  ;;  %v1652_v32 = vmul.f32 %v5111_v45, %v1651_v22  ;;  %2913 = vst [vmem:[%s4953_s28 + $0x8] sm:$0xff] %v2841_v20  }
 0x1be   : > { %3210 = vpow2.f32 %v2701_v26  ;;  %v5189_v21 = vadd.f32 %v688_v31, %v3649_v2  ;;  %v2169_v23 = vadd.f32 %v4857_v61, %v2168_v5  ;;  %v1637_v28 = vmul.f32 %v5096_v33, %v1636_v49  ;;  %v690_v5 = vpop.f32.mrf.mxu1  ;;  %vm5257_vm10 = vmor %vm1639_vm4, %vm1640_vm2 }
 0x1bf   : > { %v1658_v56 = vand.u32 2147483647, %v5033_v14  ;;  %v1660_v25 = vand.u32 2147483648, %v5033_v14  ;;  %v1667_v37 = vmul.f32 %v5167_v44, %v1666_v46  ;;  %v3205_v47 = vpop.eup %3204  ;;  %vm1655_vm5 = vweird.f32 %v5111_v45 }
 0x1c0   : > { %v2256_v11 = vadd.f32 %v2255_v30, %v2167_v18  ;;  %v2258_v17 = vadd.f32 %v2257_v7, %v2169_v23  ;;  %v5198_v62 = vadd.f32 %v601_v58, %v3647_v1  ;;  %v3207_v35 = vpop.eup %3206  ;;  %v5200_v54 = vadd.f32 1.0, %v3205_v47  ;;  %vm5232_vm8 = vmor %vm1654_vm3, %vm1655_vm5  ;;  %v604_v47 = vpop.f32.mrf.mxu0 }
 0x1c1   : > { %v2003_v38 = vpack.c.bf16 %v1961_v0, %v5139_v9  ;;  %v2004_v3 = vpack.c.bf16 %v1962_v40, %v5142_v42  ;;  %v2702_v51 = vmul.f32 -1.442695, %v5183_v60  ;;  %v1653_v39 = vadd.f32 %v5111_v45, %v1652_v32 }
 0x1c2   : > { %v5206_v59 = vadd.f32 1.0, %v3207_v35  ;;  %v2703_v30 = vmul.f32 -1.442695, %v5189_v21  ;;  %v2846_v8 = vpack.c.bf16 %v2258_v17, %v2256_v11  ;;  %v1668_v22 = vadd.f32 %v5167_v44, %v1667_v37 }
 0x1c3   : > { %v3209_v34 = vpop.eup %3208  ;;  %vm1670_vm6 = vweird.f32 %v5167_v44  ;;  %3212 = vrcp.f32 %v5200_v54  ;;  %v2704_v9 = vmul.f32 -1.442695, %v5198_v62  ;;  %v1623_v16 = vadd.f32 %v5043_v41, %v1622_v12 }
 0x1c4   : > { %v3211_v42 = vpop.eup %3210  ;;  %v1638_v49 = vadd.f32 %v5096_v33, %v1637_v28  ;;  %v1675_v4 = vand.u32 2147483648, %v5086_v10  ;;  %3214 = vrcp.f32 %v5206_v59  ;;  %2914 = vst [vmem:[%s4953_s28 + $0x10] sm:$0xff] %v2846_v8   ;;  %v1646_v48 = vor.u32 1.1754944e-38, %v1645_v50  ;;  %2205 = vmatmul.bf16.gmra.mxu2 %v2003_v38  ;;  %2294 = vmatmul.bf16.gmra.mxu3 %v2004_v3 }
 0x1c5   : > { %vm1669_vm9 = vweird.f32 %v5086_v10  ;;  %v1673_v31 = vand.u32 2147483647, %v5086_v10  ;;  %3216 = vpow2.f32 %v2702_v51  ;;  %v1657_v50 = vsel %vm5232_vm8, %v5111_v45, %v1653_v39  ;;  %v5251_v10 = vpop.f32.mrf.mxu2 }
 0x1c6   : > { %vm5243_vm11 = vmor %vm1669_vm9, %vm1670_vm6  ;;  %v5247_v0 = vadd.f32 1.0, %v3209_v34  ;;  %v5249_v20 = vadd.f32 1.0, %v3211_v42  ;;  %3218 = vpow2.f32 %v2703_v30  ;;  %vm1659_vm12 = vcmp.eq.f32.partialorder %v1658_v56, 8.507059e+37 }
 0x1c7   : > { %v1661_v45 = vor.u32 1.1754944e-38, %v1660_v25  ;;  %v1672_v18 = vsel %vm5243_vm11, %v5167_v44, %v1668_v22  ;;  %3220 = vpow2.f32 %v2704_v9  ;;  %v1627_v40 = vsel %vm5218_vm7, %v5043_v41, %v1623_v16 }
 0x1c8   : > { %v1642_v46 = vsel %vm5257_vm10, %v5096_v33, %v1638_v49  ;;  %v1676_v58 = vor.u32 1.1754944e-38, %v1675_v4  ;;  %3222 = vrcp.f32 %v5247_v0  ;;  %vm1674_vm13 = vcmp.eq.f32.partialorder %v1673_v31, 8.507059e+37 }
 0x1c9   : > { %v5271_v32 = vpop.eup %3212  ;;  %v1662_v23 = vsel %vm1659_vm12, %v1661_v45, %v1657_v50  ;;  %3224 = vrcp.f32 %v5249_v20  ;;  %v5275_v44 = vadd.f32 %v690_v5, %v3649_v2  ;;  %vm1629_vm14 = vcmp.eq.f32.partialorder %v1628_v52, 8.507059e+37 }
 0x1ca   : > { %v5277_v28 = vpop.eup %3214  ;;  %vm1644_vm15 = vcmp.eq.f32.partialorder %v1643_v43, 8.507059e+37  ;;  %v1677_v41 = vsel %vm1674_vm13, %v1676_v58, %v1672_v18  ;;  %v1680_v33 = vmul.f32 %v5271_v32, %v5200_v54  ;;  %v1632_v25 = vsel %vm1629_vm14, %v5125_v63, %v1627_v40  ;;  %v5289_v52 = vpop.f32.mrf.mxu3 }
 0x1cb   : > { %v3217_v56 = vpop.eup %3216  ;;  %v1647_v37 = vsel %vm1644_vm15, %v1646_v48, %v1642_v46  ;;  %v1695_v7 = vmul.f32 %v5277_v28, %v5206_v59  ;;  %v1965_v17 = vmul.f32 %v1662_v23, %v4889_v19  ;;  %v1966_v43 = vmul.f32 %v1677_v41, %v4970_v6 }
 0x1cc   : > { %v3219_v11 = vpop.eup %3218  ;;  %v1681_v55 = vsub.f32 1.0, %v1680_v33  ;;  %v2705_v35 = vmul.f32 -1.442695, %v5275_v44  ;;  %v1963_v63 = vmul.f32 %v1632_v25, %v4849_v29  ;;  %v1964_v3 = vmul.f32 %v1647_v37, %v4865_v36  ;;  %v693_v29 = vpop.f32.mrf.mxu1 }
 0x1cd   : > { %v3221_v15 = vpop.eup %3220  ;;  %vm1684_vm0 = vweird.f32 %v5200_v54  ;;  %v5299_v51 = vadd.f32 %v604_v47, %v3647_v1  ;;  %v5301_v19 = vpop.f32.mrf.mxu2  ;;  %v1688_v30 = vand.u32 2147483647, %v5200_v54  ;;  %v1690_v6 = vand.u32 2147483648, %v5200_v54 }
 0x1ce   : > { %v5293_v38 = vpop.eup %3222  ;;  %v1696_v8 = vsub.f32 1.0, %v1695_v7  ;;  %v1682_v36 = vmul.f32 %v5271_v32, %v1681_v55  ;;  %v5312_v9 = vadd.f32 1.0, %v3217_v56  ;;  %v2005_v42 = vpack.c.bf16 %v1965_v17, %v1963_v63  ;;  %v606_v37 = vpop.f32.mrf.mxu0 }
 0x1cf   : > { %v5303_v39 = vpop.eup %3224  ;;  %v1710_v34 = vmul.f32 %v5293_v38, %v5247_v0  ;;  %v5314_v13 = vadd.f32 1.0, %v3219_v11  ;;  %3226 = vpow2.f32 %v2705_v35  ;;  %v2006_v49 = vpack.c.bf16 %v1966_v43, %v1964_v3 }
 0x1d0   : > { %v1725_v22 = vmul.f32 %v5303_v39, %v5249_v20  ;;  %vm1699_vm1 = vweird.f32 %v5206_v59  ;;  %vm1714_vm2 = vweird.f32 %v5247_v0  ;;  %v5318_v48 = vadd.f32 1.0, %v3221_v15 }
 0x1d1   : > { %v1711_v16 = vsub.f32 1.0, %v1710_v34  ;;  %v1697_v12 = vmul.f32 %v5277_v28, %v1696_v8  ;;  %vm1715_vm3 = vweird.f32 %v5293_v38  ;;  %v1720_v5 = vand.u32 2147483648, %v5247_v0 }
 0x1d2   : > { %v1726_v4 = vsub.f32 1.0, %v1725_v22  ;;  %v1683_v50 = vadd.f32 %v5271_v32, %v1682_v36  ;;  %vm1685_vm4 = vweird.f32 %v5271_v32  ;;  %3228 = vrcp.f32 %v5312_v9  ;;  %v5328_v26 = vpop.f32.mrf.mxu3  ;;  %vm5336_vm6 = vmor %vm1714_vm2, %vm1715_vm3 }
 0x1d3   : > { %v1712_v31 = vmul.f32 %v5293_v38, %v1711_v16  ;;  %v1718_v18 = vand.u32 2147483647, %v5247_v0  ;;  %vm1730_vm5 = vweird.f32 %v5303_v39  ;;  %3230 = vrcp.f32 %v5314_v13  ;;  %vm5350_vm7 = vmor %vm1684_vm0, %vm1685_vm4 }
 0x1d4   : > { %v1727_v14 = vmul.f32 %v5303_v39, %v1726_v4  ;;  %2210 = vmatmul.bf16.gmra.mxu2 %v2005_v42  ;;  %2299 = vmatmul.bf16.gmra.mxu3 %v2006_v49  ;;  %v1733_v58 = vand.u32 2147483647, %v5249_v20  ;;  %v1735_v23 = vand.u32 2147483648, %v5249_v20  ;;  %3232 = vrcp.f32 %v5318_v48  ;;  %v695_v15 = vpop.f32.mrf.mxu1 }
 0x1d5   : > { %v1713_v45 = vadd.f32 %v5293_v38, %v1712_v31  ;;  %v5344_v41 = vpop.f32.mrf.mxu2  ;;  %v3227_v33 = vpop.eup %3226  ;;  %v1698_v56 = vadd.f32 %v5277_v28, %v1697_v12  ;;  %vm1700_vm8 = vweird.f32 %v5277_v28  ;;  %vm1729_vm9 = vweird.f32 %v5249_v20 }
 0x1d6   : > { %v1728_v46 = vadd.f32 %v5303_v39, %v1727_v14  ;;  %v1687_v7 = vsel %vm5350_vm7, %v5271_v32, %v1683_v50  ;;  %vm5363_vm11 = vcmp.eq.f32.partialorder %v1688_v30, 8.507059e+37  ;;  %v1705_v47 = vand.u32 2147483648, %v5206_v59  ;;  %vm5370_vm10 = vmor %vm1729_vm9, %vm1730_vm5  ;;  %v609_v40 = vpop.f32.mrf.mxu0 }
 0x1d7   : > { %v1717_v25 = vsel %vm5336_vm6, %v5293_v38, %v1713_v45  ;;  %v1721_v11 = vor.u32 1.1754944e-38, %v1720_v5  ;;  %v1691_v55 = vor.u32 1.1754944e-38, %v1690_v6  ;;  %v1703_v20 = vand.u32 2147483647, %v5206_v59  ;;  %vm5384_vm13 = vmor %vm1699_vm1, %vm1700_vm8 }
 0x1d8   : > { %vm1719_vm12 = vcmp.eq.f32.partialorder %v1718_v18, 8.507059e+37  ;;  %v1732_v32 = vsel %vm5370_vm10, %v5303_v39, %v1728_v46  ;;  %v5378_v43 = vpop.eup %3228  ;;  %vm1734_vm14 = vcmp.eq.f32.partialorder %v1733_v58, 8.507059e+37  ;;  %v1736_v63 = vor.u32 1.1754944e-38, %v1735_v23 }
 0x1d9   : > { %v1722_v38 = vsel %vm1719_vm12, %v1721_v11, %v1717_v25  ;;  %v5388_v3 = vadd.f32 1.0, %v3227_v33  ;;  %v5390_v30 = vpop.eup %3230  ;;  %v1692_v39 = vsel %vm5363_vm11, %v1691_v55, %v1687_v7  ;;  %v1702_v6 = vsel %vm5384_vm13, %v5277_v28, %v1698_v56 }
 0x1da   : > { %v2706_v59 = vmul.f32 -1.442695, %v5299_v51  ;;  %v5399_v8 = vadd.f32 %v693_v29, %v3649_v2  ;;  %v5401_v34 = vpop.eup %3232  ;;  %v1706_v36 = vor.u32 1.1754944e-38, %v1705_v47  ;;  %v1737_v22 = vsel %vm1734_vm14, %v1736_v63, %v1732_v32  ;;  %v5404_v42 = vpop.f32.mrf.mxu3 }
 0x1db   : > { %3234 = vrcp.f32 %v5388_v3  ;;  %vm1704_vm15 = vcmp.eq.f32.partialorder %v1703_v20, 8.507059e+37  ;;  %v1969_v16 = vmul.f32 %v1722_v38, %v5162_v27  ;;  %v1740_v49 = vmul.f32 %v5378_v43, %v5312_v9 }
 0x1dc   : > { %v1967_v28 = vmul.f32 %v1692_v39, %v5136_v57  ;;  %v1707_v4 = vsel %vm1704_vm15, %v1706_v36, %v1702_v6  ;;  %v2172_v29 = vadd.f32 %v4857_v61, %v5251_v10  ;;  %3236 = vpow2.f32 %v2706_v59 }
 0x1dd   : > { %v2178_v12 = vpop.f32.mrf.mxu2  ;;  %v1970_v31 = vmul.f32 %v1737_v22, %v5165_v24  ;;  %v1755_v5 = vmul.f32 %v5390_v30, %v5314_v13  ;;  %v1770_v50 = vmul.f32 %v5401_v34, %v5318_v48  ;;  %v2707_v27 = vmul.f32 -1.442695, %v5399_v8 }
 0x1de   : > { %v2174_v14 = vadd.f32 %v4857_v61, %v5301_v19  ;;  %v5421_v57 = vadd.f32 %v606_v37, %v3647_v1  ;;  %v5424_v10 = vadd.f32 %v695_v15, %v3649_v2  ;;  %v1968_v45 = vmul.f32 %v1707_v4, %v5148_v53  ;;  %v698_v37 = vpop.f32.mrf.mxu1 }
 0x1df   : > { %v1741_v24 = vsub.f32 1.0, %v1740_v49  ;;  %3238 = vpow2.f32 %v2707_v27  ;;  %v2007_v18 = vpack.c.bf16 %v1969_v16, %v1967_v28  ;;  %v2261_v58 = vadd.f32 %v5289_v52, %v2172_v29 }
 0x1e0   : > { %v2263_v23 = vadd.f32 %v5328_v26, %v2174_v14  ;;  %v2708_v19 = vmul.f32 -1.442695, %v5421_v57  ;;  %v2709_v33 = vmul.f32 -1.442695, %v5424_v10  ;;  %v1756_v0 = vsub.f32 1.0, %v1755_v5 }
 0x1e1   : > { %v5427_v46 = vpop.eup %3234  ;;  %v1771_v56 = vsub.f32 1.0, %v1770_v50  ;;  %v2008_v25 = vpack.c.bf16 %v1970_v31, %v1968_v45  ;;  %v5436_v47 = vadd.f32 %v609_v40, %v3647_v1  ;;  %v1742_v11 = vmul.f32 %v5378_v43, %v1741_v24 }
 0x1e2   : > { %v3237_v53 = vpop.eup %3236  ;;  %v1785_v7 = vmul.f32 %v5427_v46, %v5388_v3  ;;  %v2851_v54 = vpack.c.bf16 %v2263_v23, %v2261_v58  ;;  %3240 = vpow2.f32 %v2708_v19  ;;  %v2267_v52 = vpop.f32.mrf.mxu3  ;;  %v1748_v17 = vand.u32 2147483647, %v5312_v9 }
 0x1e3   : > { %v5438_v26 = vadd.f32 1.0, %v3237_v53  ;;  %3242 = vpow2.f32 %v2709_v33  ;;  %v2710_v55 = vmul.f32 -1.442695, %v5436_v47  ;;  %v5445_v20 = vadd.f32 %v698_v37, %v3649_v2 }
 0x1e4   : > { %2215 = vmatmul.bf16.gmra.mxu2 %v2007_v18  ;;  %2304 = vmatmul.bf16.gmra.mxu3 %v2008_v25  ;;  %2915 = vst [vmem:[%s4953_s28 + $0x18] sm:$0xff] %v2851_v54   ;;  %v1757_v35 = vmul.f32 %v5390_v30, %v1756_v0  ;;  %v1772_v38 = vmul.f32 %v5401_v34, %v1771_v56  ;;  %vm1744_vm0 = vweird.f32 %v5312_v9  ;;  %v1786_v63 = vsub.f32 1.0, %v1785_v7 }
 0x1e5   : > { %v5447_v32 = vpop.f32.mrf.mxu2  ;;  %v3239_v15 = vpop.eup %3238  ;;  %vm1745_vm1 = vweird.f32 %v5378_v43  ;;  %v1750_v6 = vand.u32 2147483648, %v5312_v9  ;;  %3244 = vrcp.f32 %v5438_v26  ;;  %v2711_v59 = vmul.f32 -1.442695, %v5445_v20 }
 0x1e6   : > { %v5452_v39 = vadd.f32 1.0, %v3239_v15  ;;  %v1743_v22 = vadd.f32 %v5378_v43, %v1742_v11  ;;  %vm5459_vm2 = vcmp.eq.f32.partialorder %v1748_v17, 8.507059e+37  ;;  %vm1760_vm3 = vweird.f32 %v5390_v30  ;;  %vm5480_vm5 = vmor %vm1744_vm0, %vm1745_vm1 }
 0x1e7   : > { %vm1775_vm4 = vweird.f32 %v5401_v34  ;;  %3246 = vpow2.f32 %v2710_v55  ;;  %v1758_v28 = vadd.f32 %v5390_v30, %v1757_v35  ;;  %v1773_v4 = vadd.f32 %v5401_v34, %v1772_v38 }
 0x1e8   : > { %v3241_v36 = vpop.eup %3240  ;;  %3248 = vrcp.f32 %v5452_v39  ;;  %v1787_v31 = vmul.f32 %v5427_v46, %v1786_v63  ;;  %v2179_v50 = vadd.f32 %v4857_v61, %v2178_v12  ;;  %vm1759_vm6 = vweird.f32 %v5314_v13  ;;  %v611_v63 = vpop.f32.mrf.mxu0 }
 0x1e9   : > { %v3243_v49 = vpop.eup %3242  ;;  %v5468_v29 = vadd.f32 1.0, %v3241_v36  ;;  %3250 = vpow2.f32 %v2711_v59  ;;  %v1765_v45 = vand.u32 2147483648, %v5314_v13  ;;  %v1780_v24 = vand.u32 2147483648, %v5318_v48  ;;  %vm5490_vm7 = vmor %vm1759_vm6, %vm1760_vm3 }
 0x1ea   : > { %v5471_v5 = vadd.f32 1.0, %v3243_v49  ;;  %v5474_v27 = vpop.f32.mrf.mxu3  ;;  %v1763_v9 = vand.u32 2147483647, %v5314_v13  ;;  %vm1774_vm8 = vweird.f32 %v5318_v48  ;;  %v1778_v18 = vand.u32 2147483647, %v5318_v48 }
 0x1eb   : > { %3252 = vrcp.f32 %v5468_v29  ;;  %v2177_v40 = vadd.f32 %v4857_v61, %v5344_v41  ;;  %v5501_v23 = vpop.eup %3244  ;;  %v1747_v19 = vsel %vm5480_vm5, %v5378_v43, %v1743_v22  ;;  %v1751_v33 = vor.u32 1.1754944e-38, %v1750_v6  ;;  %vm5511_vm9 = vmor %vm1774_vm8, %vm1775_vm4 }
 0x1ec   : > { %v1762_v13 = vsel %vm5490_vm7, %v5390_v30, %v1758_v28  ;;  %3254 = vrcp.f32 %v5471_v5  ;;  %v1777_v41 = vsel %vm5511_vm9, %v5401_v34, %v1773_v4  ;;  %v1788_v43 = vadd.f32 %v5427_v46, %v1787_v31 }
 0x1ed   : > { %v5499_v58 = vpop.f32.mrf.mxu2  ;;  %v3247_v61 = vpop.eup %3246  ;;  %vm1790_vm11 = vweird.f32 %v5427_v46  ;;  %v2268_v0 = vadd.f32 %v2267_v52, %v2179_v50  ;;  %v1766_v30 = vor.u32 1.1754944e-38, %v1765_v45  ;;  %v1781_v25 = vor.u32 1.1754944e-38, %v1780_v24 }
 0x1ee   : > { %v5521_v56 = vpop.eup %3248  ;;  %v1793_v37 = vand.u32 2147483647, %v5388_v3  ;;  %v1795_v53 = vand.u32 2147483648, %v5388_v3  ;;  %vm1764_vm10 = vcmp.eq.f32.partialorder %v1763_v9, 8.507059e+37  ;;  %vm1779_vm12 = vcmp.eq.f32.partialorder %v1778_v18, 8.507059e+37 }
 0x1ef   : > { %v3251_v7 = vpop.eup %3250  ;;  %vm1789_vm13 = vweird.f32 %v5388_v3  ;;  %v2266_v34 = vadd.f32 %v5404_v42, %v2177_v40  ;;  %v1752_v52 = vsel %vm5459_vm2, %v1751_v33, %v1747_v19  ;;  %v1767_v11 = vsel %vm1764_vm10, %v1766_v30, %v1762_v13  ;;  %v700_v40 = vpop.f32.mrf.mxu1 }
 0x1f0   : > { %v1782_v17 = vsel %vm1779_vm12, %v1781_v25, %v1777_v41  ;;  %vm5533_vm14 = vmor %vm1789_vm13, %vm1790_vm11  ;;  %v1810_v15 = vand.u32 2147483648, %v5438_v26  ;;  %v1800_v42 = vmul.f32 %v5501_v23, %v5438_v26  ;;  %vm1794_vm15 = vcmp.eq.f32.partialorder %v1793_v37, 8.507059e+37 }
 0x1f1   : > { %v5527_v54 = vpop.eup %3252  ;;  %v1792_v3 = vsel %vm5533_vm14, %v5427_v46, %v1788_v43  ;;  %v2856_v38 = vpack.c.bf16 %v2268_v0, %v2266_v34  ;;  %v1796_v36 = vor.u32 1.1754944e-38, %v1795_v53  ;;  %v1815_v22 = vmul.f32 %v5521_v56, %v5452_v39 }
 0x1f2   : > { %v1830_v35 = vmul.f32 %v5527_v54, %v5468_v29  ;;  %v5545_v6 = vpop.f32.mrf.mxu3  ;;  %v5547_v59 = vpop.eup %3254  ;;  %v5551_v16 = vadd.f32 1.0, %v3247_v61  ;;  %v1971_v46 = vmul.f32 %v1752_v52, %v5183_v60  ;;  %v5556_v4 = vadd.f32 1.0, %v3251_v7 }
 0x1f3   : > { %v1845_v28 = vmul.f32 %v5547_v59, %v5471_v5  ;;  %2916 = vst [vmem:[%s4953_s28 + $0x20] sm:$0xff] %v2856_v38   ;;  %v1972_v50 = vmul.f32 %v1767_v11, %v5189_v21  ;;  %v1973_v14 = vmul.f32 %v1782_v17, %v5198_v62  ;;  %v1797_v45 = vsel %vm1794_vm15, %v1796_v36, %v1792_v3  ;;  %v5614_v38 = vld [vmem:[%s5806_s4] ss:$0 sm:$0xff] }
 0x1f4   : > { %v1831_v49 = vsub.f32 1.0, %v1830_v35  ;;  %v5562_v24 = vadd.f32 %v611_v63, %v3647_v1  ;;  %v1801_v12 = vsub.f32 1.0, %v1800_v42  ;;  %v1808_v9 = vand.u32 2147483647, %v5438_v26 }
 0x1f5   : > { %v2186_v31 = vpop.f32.mrf.mxu2  ;;  %v5565_v60 = vor.u32 1.1754944e-38, %v1810_v15  ;;  %v1846_v18 = vsub.f32 1.0, %v1845_v28  ;;  %v1816_v19 = vsub.f32 1.0, %v1815_v22  ;;  %v1823_v33 = vand.u32 2147483647, %v5452_v39 }
 0x1f6   : > { %v1825_v13 = vand.u32 2147483648, %v5452_v39  ;;  %3256 = vrcp.f32 %v5551_v16  ;;  %v1974_v21 = vmul.f32 %v1797_v45, %v5275_v44  ;;  %vm1804_vm0 = vweird.f32 %v5438_v26 }
 0x1f7   : > { %v1832_v1 = vmul.f32 %v5527_v54, %v1831_v49  ;;  %v1838_v62 = vand.u32 2147483647, %v5468_v29  ;;  %3258 = vrcp.f32 %v5556_v4  ;;  %vm1805_vm1 = vweird.f32 %v5501_v23 }
 0x1f8   : > { %vm1819_vm2 = vweird.f32 %v5452_v39  ;;  %v1847_v48 = vmul.f32 %v5547_v59, %v1846_v18  ;;  %v2712_v61 = vmul.f32 -1.442695, %v5562_v24  ;;  %v5580_v41 = vadd.f32 %v700_v40, %v3649_v2  ;;  %vm5651_vm13 = vmor %vm1804_vm0, %vm1805_vm1 }
 0x1f9   : > { %v1802_v44 = vmul.f32 %v5501_v23, %v1801_v12  ;;  %vm1834_vm3 = vweird.f32 %v5468_v29  ;;  %v1840_v43 = vand.u32 2147483648, %v5468_v29  ;;  %vm1849_vm4 = vweird.f32 %v5471_v5 }
 0x1fa   : > { %v2275_v0 = vpop.f32.mrf.mxu3  ;;  %v1817_v30 = vmul.f32 %v5521_v56, %v1816_v19  ;;  %v1853_v25 = vand.u32 2147483647, %v5471_v5  ;;  %3260 = vpow2.f32 %v2712_v61  ;;  %v2713_v37 = vmul.f32 -1.442695, %v5580_v41 }
 0x1fb   : > { %vm5589_vm5 = vcmp.eq.f32.partialorder %v1808_v9, 8.507059e+37  ;;  %v1833_v2 = vadd.f32 %v5527_v54, %v1832_v1  ;;  %vm1835_vm6 = vweird.f32 %v5527_v54  ;;  %vm5595_vm7 = vcmp.eq.f32.partialorder %v1838_v62, 8.507059e+37 }
 0x1fc   : > { %v2009_v34 = vpack.c.bf16 %v1973_v14, %v1971_v46  ;;  %v5599_v11 = vpop.eup %3256  ;;  %vm5601_vm8 = vcmp.eq.f32.partialorder %v1823_v33, 8.507059e+37  ;;  %v1848_v55 = vadd.f32 %v5547_v59, %v1847_v48  ;;  %vm1850_vm9 = vweird.f32 %v5547_v59  ;;  %vm5626_vm10 = vmor %vm1834_vm3, %vm1835_vm6 }
 0x1fd   : > { %v2188_v52 = vpop.f32.mrf.mxu2  ;;  %3262 = vpow2.f32 %v2713_v37  ;;  %v2010_v15 = vpack.c.bf16 %v1974_v21, %v1972_v50  ;;  %v5607_v3 = vpop.eup %3258  ;;  %v1803_v42 = vadd.f32 %v5501_v23, %v1802_v44  ;;  %v1855_v35 = vand.u32 2147483648, %v5471_v5  ;;  %vm5639_vm12 = vmor %vm1849_vm4, %vm1850_vm9 }
 0x1fe   : > { %2220 = vmatmul.bf16.gmra.mxu2 %v2009_v34  ;;  %v2182_v63 = vadd.f32 %v5614_v38, %v5447_v32  ;;  %v2184_v36 = vadd.f32 %v5614_v38, %v5499_v58  ;;  %v1818_v22 = vadd.f32 %v5521_v56, %v1817_v30  ;;  %vm1820_vm11 = vweird.f32 %v5521_v56 }
 0x1ff   : > { %2309 = vmatmul.bf16.gmra.mxu3 %v2010_v15  ;;  %v2187_v49 = vadd.f32 %v5614_v38, %v2186_v31  ;;  %v2189_v32 = vadd.f32 %v5614_v38, %v2188_v52  ;;  %v1837_v58 = vsel %vm5626_vm10, %v5527_v54, %v1833_v2  ;;  %v1860_v29 = vmul.f32 %v5599_v11, %v5551_v16  ;;  %vm5667_vm15 = vmor %vm1819_vm2, %vm1820_vm11 }
 0x200   : > { %v2271_v50 = vadd.f32 %v5474_v27, %v2182_v63  ;;  %v2273_v31 = vadd.f32 %v5545_v6, %v2184_v36  ;;  %v3261_v14 = vpop.eup %3260  ;;  %v1841_v5 = vor.u32 1.1754944e-38, %v1840_v43  ;;  %v1852_v45 = vsel %vm5639_vm12, %v5547_v59, %v1848_v55 }
 0x201   : > { %vm1854_vm14 = vcmp.eq.f32.partialorder %v1853_v25, 8.507059e+37  ;;  %v1875_v27 = vmul.f32 %v5607_v3, %v5556_v4  ;;  %v1807_v6 = vsel %vm5651_vm13, %v5501_v23, %v1803_v42  ;;  %v1856_v12 = vor.u32 1.1754944e-38, %v1855_v35 }
 0x202   : > { %v5671_v9 = vadd.f32 1.0, %v3261_v14  ;;  %v2861_v59 = vpack.c.bf16 %v2273_v31, %v2271_v50  ;;  %v2277_v18 = vpop.f32.mrf.mxu3  ;;  %v1822_v19 = vsel %vm5667_vm15, %v5521_v56, %v1818_v22  ;;  %v1842_v23 = vsel %vm5595_vm7, %v1841_v5, %v1837_v58 }
 0x203   : > { %v3263_v40 = vpop.eup %3262  ;;  %v2276_v33 = vadd.f32 %v2275_v0, %v2187_v49  ;;  %v2278_v21 = vadd.f32 %v2277_v18, %v2189_v32  ;;  %v1826_v1 = vor.u32 1.1754944e-38, %v1825_v13  ;;  %v1857_v62 = vsel %vm1854_vm14, %v1856_v12, %v1852_v45 }
 0x204   : > { %v1861_v48 = vsub.f32 1.0, %v1860_v29  ;;  %3264 = vrcp.f32 %v5671_v9  ;;  %2917 = vst [vmem:[%s4953_s28 + $0x28] sm:$0xff] %v2861_v59   ;;  %v1812_v61 = vsel %vm5589_vm5, %v5565_v60, %v1807_v6  ;;  %v1876_v44 = vsub.f32 1.0, %v1875_v27 }
 0x205   : > { %v5685_v56 = vadd.f32 1.0, %v3263_v40  ;;  %v2866_v43 = vpack.c.bf16 %v2278_v21, %v2276_v33  ;;  %v1827_v0 = vsel %vm5601_vm8, %v1826_v1, %v1822_v19  ;;  %v1977_v30 = vmul.f32 %v1842_v23, %v5421_v57 }
 0x206   : > { %v2191_v39 = vpop.f32.mrf.mxu2  ;;  %v1978_v13 = vmul.f32 %v1857_v62, %v5424_v10  ;;  %v1975_v25 = vmul.f32 %v1812_v61, %v5299_v51  ;;  %v1862_v37 = vmul.f32 %v5599_v11, %v1861_v48  ;;  %v1976_v60 = vmul.f32 %v1827_v0, %v5399_v8 }
 0x207   : > { %3266 = vrcp.f32 %v5685_v56  ;;  %2918 = vst [vmem:[%s4953_s28 + $0x30] sm:$0xff] %v2866_v43   ;;  %v1877_v53 = vmul.f32 %v5607_v3, %v1876_v44  ;;  %vm1865_vm0 = vweird.f32 %v5599_v11  ;;  %v1868_v10 = vand.u32 2147483647, %v5551_v16 }
 0x208   : > { %v2011_v7 = vpack.c.bf16 %v1977_v30, %v1975_v25  ;;  %v2012_v52 = vpack.c.bf16 %v1978_v13, %v1976_v60  ;;  %v1863_v57 = vadd.f32 %v5599_v11, %v1862_v37  ;;  %vm1864_vm1 = vweird.f32 %v5551_v16 }
 0x209   : > { %v1878_v51 = vadd.f32 %v5607_v3, %v1877_v53  ;;  %vm1880_vm2 = vweird.f32 %v5607_v3  ;;  %v1870_v55 = vand.u32 2147483648, %v5551_v16  ;;  %vm1879_vm3 = vweird.f32 %v5556_v4  ;;  %vm5708_vm4 = vmor %vm1864_vm1, %vm1865_vm0 }
 0x20a   : > { %v3265_v2 = vpop.eup %3264  ;;  %v1900_v15 = vand.u32 2147483648, %v5671_v9  ;;  %v1885_v63 = vand.u32 2147483648, %v5556_v4  ;;  %v1898_v22 = vand.u32 2147483647, %v5671_v9  ;;  %v1867_v16 = vsel %vm5708_vm4, %v5599_v11, %v1863_v57  ;;  %vm5723_vm7 = vmor %vm1879_vm3, %vm1880_vm2 }
 0x20b   : > { %v1890_v34 = vmul.f32 %v3265_v2, %v5671_v9  ;;  %vm1895_vm5 = vweird.f32 %v3265_v2  ;;  %vm5717_vm6 = vcmp.eq.f32.partialorder %v1868_v10, 8.507059e+37  ;;  %v1883_v58 = vand.u32 2147483647, %v5556_v4 }
 0x20c   : > { %v1882_v29 = vsel %vm5723_vm7, %v5607_v3, %v1878_v51  ;;  %vm1894_vm8 = vweird.f32 %v5671_v9  ;;  %v1915_v11 = vand.u32 2147483648, %v5685_v56  ;;  %v1901_v14 = vor.u32 1.1754944e-38, %v1900_v15 }
 0x20d   : > { %v3267_v17 = vpop.eup %3266  ;;  %v1891_v8 = vsub.f32 1.0, %v1890_v34  ;;  %vm1896_vm9 = vmor %vm1894_vm8, %vm1895_vm5  ;;  %v1913_v5 = vand.u32 2147483647, %v5685_v56  ;;  %v1871_v45 = vor.u32 1.1754944e-38, %v1870_v55  ;;  %v1886_v27 = vor.u32 1.1754944e-38, %v1885_v63 }
 0x20e   : > { %v1905_v42 = vmul.f32 %v3267_v17, %v5685_v56  ;;  %2225 = vmatmul.bf16.gmra.mxu2 %v2011_v7  ;;  %v2193_v46 = vpop.f32.mrf.mxu2  ;;  %vm1910_vm11 = vweird.f32 %v3267_v17  ;;  %vm1899_vm10 = vcmp.eq.f32.partialorder %v1898_v22, 8.507059e+37  ;;  %vm1884_vm12 = vcmp.eq.f32.partialorder %v1883_v58, 8.507059e+37 }
 0x20f   : > { %v1892_v36 = vmul.f32 %v3265_v2, %v1891_v8  ;;  %2314 = vmatmul.bf16.gmra.mxu3 %v2012_v52  ;;  %vm1909_vm13 = vweird.f32 %v5685_v56  ;;  %v1872_v3 = vsel %vm5717_vm6, %v1871_v45, %v1867_v16  ;;  %v1887_v12 = vsel %vm1884_vm12, %v1886_v27, %v1882_v29 }
 0x210   : > { %v1906_v28 = vsub.f32 1.0, %v1905_v42  ;;  %vm1911_vm14 = vmor %vm1909_vm13, %vm1910_vm11  ;;  %v1916_v9 = vor.u32 1.1754944e-38, %v1915_v11  ;;  %v2192_v59 = vadd.f32 %v5614_v38, %v2191_v39  ;;  %vm1914_vm15 = vcmp.eq.f32.partialorder %v1913_v5, 8.507059e+37 }
 0x211   : > { %v1893_v50 = vadd.f32 %v3265_v2, %v1892_v36  ;;  %v2194_v19 = vadd.f32 %v5614_v38, %v2193_v46  ;;  %v1979_v33 = vmul.f32 %v1872_v3, %v5436_v47  ;;  %v1980_v1 = vmul.f32 %v1887_v12, %v5445_v20 }
 0x212   : > { %v2280_v31 = vpop.f32.mrf.mxu3  ;;  %v1907_v54 = vmul.f32 %v3267_v17, %v1906_v28 }
 0x213   : > { %v1897_v4 = vsel %vm1896_vm9, %v3265_v2, %v1893_v50  ;;  %v2281_v44 = vadd.f32 %v2280_v31, %v2192_v59 }
 0x214   : > { %v1902_v6 = vsel %vm1899_vm10, %v1901_v14, %v1897_v4  ;;  %v1908_v26 = vadd.f32 %v3267_v17, %v1907_v54 }
 0x215   : > { %v1981_v18 = vmul.f32 %v1902_v6, %v5562_v24 }
 0x216   : > { %v1912_v40 = vsel %vm1911_vm14, %v3267_v17, %v1908_v26  ;;  %v2196_v48 = vpop.f32.mrf.mxu2 }
 0x217   : > { %v1917_v23 = vsel %vm1914_vm15, %v1916_v9, %v1912_v40  ;;  %v2013_v61 = vpack.c.bf16 %v1981_v18, %v1979_v33  ;;  %v2197_v39 = vadd.f32 %v5614_v38, %v2196_v48 }
 0x218   : > { %v1982_v21 = vmul.f32 %v1917_v23, %v5580_v41 }
 0x21a   : > { %v2282_v62 = vpop.f32.mrf.mxu3  ;;  %v2014_v43 = vpack.c.bf16 %v1982_v21, %v1980_v1 }
 0x21b   : > { %v2283_v56 = vadd.f32 %v2282_v62, %v2194_v19 }
 0x21d   : > { %v2871_v24 = vpack.c.bf16 %v2283_v56, %v2281_v44 }
 0x21e   : > { %2230 = vmatmul.bf16.gmra.mxu2 %v2013_v61  ;;  %v2198_v30 = vpop.f32.mrf.mxu2 }
 0x21f   : > { %2919 = vst [vmem:[%s4953_s28 + $0x38] sm:$0xff] %v2871_v24   ;;  %2319 = vmatmul.bf16.gmra.mxu3 %v2014_v43  ;;  %v2199_v47 = vadd.f32 %v5614_v38, %v2198_v30 }
 0x222   : > { %v2285_v0 = vpop.f32.mrf.mxu3 }
 0x223   : > { %v2286_v20 = vadd.f32 %v2285_v0, %v2197_v39 }
 0x22a   : > { %v2287_v41 = vpop.f32.mrf.mxu3 }
 0x22b   : > { %v2288_v13 = vadd.f32 %v2287_v41, %v2199_v47 }
 0x22d   : > { %v2876_v25 = vpack.c.bf16 %v2288_v13, %v2286_v20 }
 0x22f   : > { %2920 = vst [vmem:[%s4953_s28 + $0x40] sm:$0xff] %v2876_v25  }
 0x237   : > { %v2201_v37 = vpop.f32.mrf.mxu2  ;;  %v2290_v60 = vpop.f32.mrf.mxu3 }
 0x238   : > { %v2202_v53 = vadd.f32 %v5614_v38, %v2201_v37 }
 0x23a   : > { %v2291_v52 = vadd.f32 %v2290_v60, %v2202_v53 }
 0x23f   : > { %v2203_v2 = vpop.f32.mrf.mxu2  ;;  %v2292_v7 = vpop.f32.mrf.mxu3 }
 0x240   : > { %v2204_v34 = vadd.f32 %v5614_v38, %v2203_v2 }
 0x242   : > { %v2293_v57 = vadd.f32 %v2292_v7, %v2204_v34 }
 0x244   : > { %v2881_v10 = vpack.c.bf16 %v2293_v57, %v2291_v52 }
 0x246   : > { %2921 = vst [vmem:[%s4953_s28 + $0x48] sm:$0xff] %v2881_v10  }
 0x247   : > { %v2206_v17 = vpop.f32.mrf.mxu2  ;;  %v2295_v51 = vpop.f32.mrf.mxu3 }
 0x248   : > { %v2207_v8 = vadd.f32 %v5614_v38, %v2206_v17 }
 0x24a   : > { %v2296_v35 = vadd.f32 %v2295_v51, %v2207_v8 }
 0x24f   : > { %v2208_v55 = vpop.f32.mrf.mxu2  ;;  %v2297_v15 = vpop.f32.mrf.mxu3 }
 0x250   : > { %v2209_v42 = vadd.f32 %v5614_v38, %v2208_v55 }
 0x252   : > { %v2298_v63 = vadd.f32 %v2297_v15, %v2209_v42 }
 0x254   : > { %v2886_v36 = vpack.c.bf16 %v2298_v63, %v2296_v35 }
 0x256   : > { %2922 = vst [vmem:[%s4953_s28 + $0x50] sm:$0xff] %v2886_v36  }
 0x257   : > { %v2211_v22 = vpop.f32.mrf.mxu2  ;;  %v2300_v46 = vpop.f32.mrf.mxu3 }
 0x258   : > { %v2212_v16 = vadd.f32 %v5614_v38, %v2211_v22 }
 0x25a   : > { %v2301_v28 = vadd.f32 %v2300_v46, %v2212_v16 }
 0x25f   : > { %v2213_v49 = vpop.f32.mrf.mxu2  ;;  %v2302_v32 = vpop.f32.mrf.mxu3 }
 0x260   : > { %v2214_v58 = vadd.f32 %v5614_v38, %v2213_v49 }
 0x262   : > { %v2303_v29 = vadd.f32 %v2302_v32, %v2214_v58 }
 0x264   : > { %v2891_v50 = vpack.c.bf16 %v2303_v29, %v2301_v28 }
 0x266   : > { %2923 = vst [vmem:[%s4953_s28 + $0x58] sm:$0xff] %v2891_v50  }
 0x267   : > { %v2216_v11 = vpop.f32.mrf.mxu2  ;;  %v2305_v31 = vpop.f32.mrf.mxu3 }
 0x268   : > { %v2217_v14 = vadd.f32 %v5614_v38, %v2216_v11 }
 0x26a   : > { %v2306_v27 = vadd.f32 %v2305_v31, %v2217_v14 }
 0x26f   : > { %v2218_v54 = vpop.f32.mrf.mxu2  ;;  %v2307_v45 = vpop.f32.mrf.mxu3 }
 0x270   : > { %v2219_v5 = vadd.f32 %v5614_v38, %v2218_v54 }
 0x272   : > { %v2308_v4 = vadd.f32 %v2307_v45, %v2219_v5 }
 0x274   : > { %v2896_v6 = vpack.c.bf16 %v2308_v4, %v2306_v27 }
 0x276   : > { %2924 = vst [vmem:[%s4953_s28 + $0x60] sm:$0xff] %v2896_v6  }
 0x281   : > { %v2221_v26 = vpop.f32.mrf.mxu2 }
 0x282   : > { %v2310_v3 = vpop.f32.mrf.mxu3  ;;  %v2222_v12 = vadd.f32 %v5614_v38, %v2221_v26 }
 0x284   : > { %v2311_v40 = vadd.f32 %v2310_v3, %v2222_v12 }
 0x289   : > { %v2223_v9 = vpop.f32.mrf.mxu2 }
 0x28a   : > { %v2224_v59 = vadd.f32 %v5614_v38, %v2223_v9  ;;  %v2312_v18 = vpop.f32.mrf.mxu3 }
 0x28c   : > { %v2313_v19 = vadd.f32 %v2312_v18, %v2224_v59 }
 0x28e   : > { %v2901_v23 = vpack.c.bf16 %v2313_v19, %v2311_v40 }
 0x290   : > { %2925 = vst [vmem:[%s4953_s28 + $0x68] sm:$0xff] %v2901_v23  }
 0x291   : > { %v2226_v33 = vpop.f32.mrf.mxu2 }
 0x292   : > { %v2315_v21 = vpop.f32.mrf.mxu3  ;;  %v2227_v1 = vadd.f32 %v5614_v38, %v2226_v33 }
 0x294   : > { %v2316_v44 = vadd.f32 %v2315_v21, %v2227_v1 }
 0x299   : > { %v2228_v62 = vpop.f32.mrf.mxu2 }
 0x29a   : > { %v2229_v48 = vadd.f32 %v5614_v38, %v2228_v62  ;;  %v2317_v61 = vpop.f32.mrf.mxu3 }
 0x29c   : > { %v2318_v56 = vadd.f32 %v2317_v61, %v2229_v48 }
 0x29e   : > { %v2906_v43 = vpack.c.bf16 %v2318_v56, %v2316_v44 }
 0x2a0   : > { %2926 = vst [vmem:[%s4953_s28 + $0x70] sm:$0xff] %v2906_v43  }
 0x2a1   : > { %v2231_v24 = vpop.f32.mrf.mxu2 }
 0x2a2   : > { %v2320_v0 = vpop.f32.mrf.mxu3  ;;  %v2232_v30 = vadd.f32 %v5614_v38, %v2231_v24 }
 0x2a4   : > { %v2321_v20 = vadd.f32 %v2320_v0, %v2232_v30 }
 0x2a9   : > { %v2233_v39 = vpop.f32.mrf.mxu2 }
 0x2aa   : > { %v2234_v47 = vadd.f32 %v5614_v38, %v2233_v39  ;;  %v2322_v41 = vpop.f32.mrf.mxu3 }
 0x2ac   : > { %v2323_v13 = vadd.f32 %v2322_v41, %v2234_v47 }
 0x2ae   : > { %v2911_v25 = vpack.c.bf16 %v2323_v13, %v2321_v20 }
 0x2b0   : > { %2927 = vst [vmem:[%s4953_s28 + $0x78] sm:$0xff] %v2911_v25  }
 0x2b1   : > { %3416 = shalt.err (!%p3413_p10)
}
 0x2b2   : > { %s3472_s17 = smov 64   ;;  %s3473_s28 = smov 4  }
 0x2b3   : > { %2942 = dma.vmem_to_hbm [thread:$0]  (%p3589_p3), %s2403_s14, 2048, %s2405_s15, %s2390_s22, %s3472_s17, %s3472_s17, %s3473_s28  }
 0x2b4 PF: > { %s2419_s23 = sand.u32 1, %s3451_s18   ;;  %p5994_p12 = scmp.ge.s32.totalorder %s3463_s21, 2 }
 0x2b5   : > { %s2420_s26 = scalar_lea.sflag [#allocation4], %s2419_s23 }
 0x2b6   : > { %p2959_p13 = pnand %p5994_p12, %p3539_p6 }
 0x2b8   : > { %p2960_p0 = pneg %p2959_p13 }
 0x2ba   : > { %3446 = dma.done.wait (%p2960_p0), %s2420_s26, 2048  }
 0x2bb   : > { %3448 = vsyncadd (%p2960_p0), %s2420_s26, 4294965248  ;;  %p20_p5 = scmp.ge.s32.totalorder %s3576_s30, 4   ;;  %s5995_s18 = smov %s3455_s19 }
 0x2bc   : > { %s5996_s19 = smov %s3459_s20  ;;  %s5997_s20 = smov %s3585_s9 }
 0x2bd   : > { %s5998_s21 = smov %s3576_s30  ;;  %22 = sbr.rel (!%p20_p5) target bundleno = 7 (0x7), region = 97 }
 0x2c2   :  { %2426 = vsyncpa [#allocation3], 1 }
 0x2c3   :  { %2428 = vsyncpa [#allocation3 + $0x1], 1 }
 0x2c4   :  { %2429 = vsyncpa [#allocation6], 1 }
 0x2c5   :  { %2430 = vsyncpa [#allocation9], 1 }
 0x2c6   :  { %2431 = vsyncpa [#allocation4], 1 }
 0x2c7   :  { %2433 = vsyncpa [#allocation4 + $0x1], 1 }

</bundles_post_ra>
